<compile_context>
chip_gen: v5e
topology: v5e:2x2
jax: 0.10.0
libtpu: 0.0.40
codegen_flags: <defaults>
</compile_context>

<pallas_src>
import jax
import jax.numpy as jnp
from jax.experimental import pallas as pl
from jax.experimental.pallas import tpu as pltpu


# ------------------------- fixed shapes of the net --------------------------
H0 = W0 = 32          # input spatial
C0 = 3                # input channels
K = 5                 # conv kernel size
C1 = 6                # conv1 out channels
H1 = W1 = H0 - K + 1  # 28  (conv1 output)
HP1 = WP1 = H1 // 2   # 14  (pool1 output)
C2 = 16               # conv2 out channels
H2 = W2 = HP1 - K + 1 # 10  (conv2 output)
HP2 = WP2 = H2 // 2   # 5   (pool2 output)
FC1_IN = C2 * HP2 * WP2   # 400
FC1_OUT = 32
FC2_OUT = 2


# ------------------------------ fused kernel --------------------------------

def _net_fused_kernel(x_ref, w1_ref, b1_ref, r1_ref, s1_ref,
                      w2_ref, b2_ref, r2_ref, s2_ref,
                      wfc1_ref, bfc1_ref, wfc2_ref, bfc2_ref,
                      o_ref, p1_ref, p2_ref):
    f32 = jnp.float32

    # ---- conv1 + bias + ReLU: 5 row-shifted dots vs block-Toeplitz weights --
    # x_ref block: (1, 32, C0*W0=96), channel-major rows: col = c*W0 + w
    c1 = jnp.dot(x_ref[0, 0:H1, :], w1_ref[0], preferred_element_type=f32)
    for i in range(1, K):
        c1 = c1 + jnp.dot(x_ref[0, i:i + H1, :], w1_ref[i],
                          preferred_element_type=f32)
    c1 = jnp.maximum(c1 + b1_ref[...], 0.0)                    # (28, 6*28=168)

    # ---- maxpool1 (2x2/2): row-select dots + lane-select dots + max ---------
    hrow = jnp.maximum(jnp.dot(r1_ref[0], c1, preferred_element_type=f32),
                       jnp.dot(r1_ref[1], c1, preferred_element_type=f32))
    p1_ref[...] = jnp.maximum(
        jnp.dot(hrow, s1_ref[0], preferred_element_type=f32),
        jnp.dot(hrow, s1_ref[1], preferred_element_type=f32))  # (14, 6*14=84)

    # ---- conv2 + bias + ReLU ------------------------------------------------
    c2 = jnp.dot(p1_ref[0:H2, :], w2_ref[0], preferred_element_type=f32)
    for i in range(1, K):
        c2 = c2 + jnp.dot(p1_ref[i:i + H2, :], w2_ref[i],
                          preferred_element_type=f32)
    c2 = jnp.maximum(c2 + b2_ref[...], 0.0)                    # (10, 16*10=160)

    # ---- maxpool2 -----------------------------------------------------------
    hrow2 = jnp.maximum(jnp.dot(r2_ref[0], c2, preferred_element_type=f32),
                        jnp.dot(r2_ref[1], c2, preferred_element_type=f32))
    p2_ref[...] = jnp.maximum(
        jnp.dot(hrow2, s2_ref[0], preferred_element_type=f32),
        jnp.dot(hrow2, s2_ref[1], preferred_element_type=f32))  # (5, 16*5=80)

    # ---- fc1 + ReLU (NCHW-flatten permutation folded into wfc1), then fc2 ---
    y = bfc1_ref[...]                                           # (1, 32)
    for h in range(HP2):
        y = y + jnp.dot(p2_ref[h:h + 1, :], wfc1_ref[h],
                        preferred_element_type=f32)
    y = jnp.maximum(y, 0.0)
    o_ref[0] = (jnp.dot(y, wfc2_ref[...], preferred_element_type=f32)
                + bfc2_ref[...])                                # (1, 2)


# --------------------- trace-time weight transformations --------------------

def _conv_row_toeplitz(w_oihw, w_in):
    """(Cout,Cin,K,K) -> (K, Cin*W_in, Cout*OW) block-Toeplitz matrices so that
    conv_out[oh, oc*OW + ow] = sum_i  x_rows[oh+i, :] @ T[i]  with x rows in
    channel-major layout (col = ci*W_in + w)."""
    cout, cin, kh, kw = w_oihw.shape
    ow = w_in - kw + 1
    delta = jnp.arange(w_in)[:, None] - jnp.arange(ow)[None, :]   # (W_in, OW)
    valid = ((delta >= 0) & (delta < kw)).astype(w_oihw.dtype)
    dclip = jnp.clip(delta, 0, kw - 1)
    mats = []
    for i in range(kh):
        wi = w_oihw[:, :, i, :]                     # (Cout, Cin, KW)
        g = wi[:, :, dclip] * valid[None, None]     # (Cout, Cin, W_in, OW)
        g = jnp.transpose(g, (1, 2, 0, 3)).reshape(cin * w_in, cout * ow)
        mats.append(g)
    return jnp.stack(mats, axis=0)


def _pool_select_mats(n_rows, width, channels, dtype=jnp.float32):
    """Selection matrices for 2x2/stride-2 max pool on a (n_rows, channels*width)
    channel-major slab.  R: (2, n_rows//2, n_rows) picks even/odd rows;
    S: (2, channels*width, channels*(width//2)) picks even/odd columns within
    each channel block (preserving channel-major layout)."""
    hr = n_rows // 2
    r = jnp.arange(hr)[:, None]
    c = jnp.arange(n_rows)[None, :]
    R = jnp.stack([(c == 2 * r).astype(dtype),
                   (c == 2 * r + 1).astype(dtype)])
    wq = width // 2
    i = jnp.arange(channels * width)[:, None]
    j = jnp.arange(channels * wq)[None, :]
    same_c = (i // width) == (j // wq)
    wcol, q = i % width, j % wq
    S = jnp.stack([(same_c & (wcol == 2 * q)).astype(dtype),
                   (same_c & (wcol == 2 * q + 1)).astype(dtype)])
    return R, S


# ------------------------------ forward pass --------------------------------

def net_forward(params, x_nchw):
    B = x_nchw.shape[0]
    f32 = jnp.float32

    # Input as per-image lane-dense row slabs: x_rows[b, h, c*W0 + w] = x[b,c,h,w]
    x_rows = jnp.transpose(x_nchw.astype(f32), (0, 2, 1, 3)).reshape(B, H0, C0 * W0)

    # Fold all layer weights into MXU-friendly operands (tiny, done at trace time).
    w1 = _conv_row_toeplitz(params["conv1_w"], W0)            # (5, 96, 168)
    b1 = jnp.repeat(params["conv1_b"], W1)[None, :]           # (1, 168)
    r1, s1 = _pool_select_mats(H1, W1, C1)                    # (2,14,28), (2,168,84)
    w2 = _conv_row_toeplitz(params["conv2_w"], WP1)           # (5, 84, 160)
    b2 = jnp.repeat(params["conv2_b"], W2)[None, :]           # (1, 160)
    r2, s2 = _pool_select_mats(H2, W2, C2)                    # (2,5,10), (2,160,80)
    # fc1: fold torch's NCHW view(-1, 400) ordering (c, h, w) into the weight
    # rows, split per pooled row h so fc1 is a sum of (1,80)@(80,32) dots.
    wfc1 = jnp.transpose(params["fc1_w"].reshape(C2, HP2, WP2, FC1_OUT),
                         (1, 0, 2, 3)).reshape(HP2, C2 * WP2, FC1_OUT)  # (5,80,32)
    bfc1 = params["fc1_b"][None, :]                           # (1, 32)
    wfc2 = params["fc2_w"]                                    # (32, 2)
    bfc2 = params["fc2_b"][None, :]                           # (1, 2)

    weight_args = (w1, b1, r1, s1, w2, b2, r2, s2, wfc1, bfc1, wfc2, bfc2)

    def full_spec(arr):
        nd = arr.ndim
        return pl.BlockSpec(arr.shape, lambda b, _nd=nd: (0,) * _nd)

    out = pl.pallas_call(
        _net_fused_kernel,
        grid=(B,),
        out_shape=jax.ShapeDtypeStruct((B, 1, FC2_OUT), f32),
        in_specs=[pl.BlockSpec((1, H0, C0 * W0), lambda b: (b, 0, 0))]
                 + [full_spec(a) for a in weight_args],
        out_specs=pl.BlockSpec((1, 1, FC2_OUT), lambda b: (b, 0, 0)),
        scratch_shapes=[pltpu.VMEM((HP1, C1 * WP1), f32),     # pool1 output
                        pltpu.VMEM((HP2, C2 * WP2), f32)],    # pool2 output
        compiler_params=pltpu.CompilerParams(
            dimension_semantics=("parallel",)),
    )(x_rows, *weight_args)
    return out.reshape(B, FC2_OUT)


# ------------------------- params & pure-JAX reference ----------------------

def init_params(key):
    ks = jax.random.split(key, 8)

    def init(k, shape, fan_in):
        return jax.random.normal(k, shape, jnp.float32) / jnp.sqrt(float(fan_in))

    return {
        "conv1_w": init(ks[0], (C1, C0, K, K), C0 * K * K),   # OIHW, like torch
        "conv1_b": init(ks[1], (C1,), C0 * K * K),
        "conv2_w": init(ks[2], (C2, C1, K, K), C1 * K * K),
        "conv2_b": init(ks[3], (C2,), C1 * K * K),
        "fc1_w":   init(ks[4], (FC1_IN, FC1_OUT), FC1_IN),    # (in, out)
        "fc1_b":   init(ks[5], (FC1_OUT,), FC1_IN),
        "fc2_w":   init(ks[6], (FC1_OUT, FC2_OUT), FC1_OUT),
        "fc2_b":   init(ks[7], (FC2_OUT,), FC1_OUT),
    }


def _reference_forward(params, x):
    dn = ("NCHW", "OIHW", "NCHW")
    y = jax.lax.conv_general_dilated(x, params["conv1_w"], (1, 1), "VALID",
                                     dimension_numbers=dn)
    y = jax.nn.relu(y + params["conv1_b"][None, :, None, None])
    y = jax.lax.reduce_window(y, -jnp.inf, jax.lax.max,
                              (1, 1, 2, 2), (1, 1, 2, 2), "VALID")
    y = jax.lax.conv_general_dilated(y, params["conv2_w"], (1, 1), "VALID",
                                     dimension_numbers=dn)
    y = jax.nn.relu(y + params["conv2_b"][None, :, None, None])
    y = jax.lax.reduce_window(y, -jnp.inf, jax.lax.max,
                              (1, 1, 2, 2), (1, 1, 2, 2), "VALID")
    y = y.reshape(y.shape[0], -1)                              # torch view(-1, 400)
    y = jax.nn.relu(y @ params["fc1_w"] + params["fc1_b"])
    return y @ params["fc2_w"] + params["fc2_b"]


if __name__ == "__main__":
    key = jax.random.PRNGKey(0)
    pkey, xkey = jax.random.split(key)
    params = init_params(pkey)
    x = jax.random.normal(xkey, (2, 3, 32, 32), jnp.float32)   # NCHW, batch=2

    out = jax.jit(net_forward)(params, x)
    jax.block_until_ready(out)
    assert out.shape == (2, 2) and out.dtype == jnp.float32

    ref = _reference_forward(params, x)
    err = float(jnp.max(jnp.abs(out - ref)))
    assert err < 5e-2, f"mismatch vs reference: max abs err = {err}"
    print("KERNEL_OK")
</pallas_src>

<mosaic_0001>
module attributes {stable_mosaic.version = 11 : i64} {
  func.func @_net_fused_kernel(%arg0: i32, %arg1: memref<1x32x96xf32, #tpu.memory_space<vmem>>, %arg2: memref<5x96x168xf32, #tpu.memory_space<vmem>>, %arg3: memref<1x168xf32, #tpu.memory_space<vmem>>, %arg4: memref<2x14x28xf32, #tpu.memory_space<vmem>>, %arg5: memref<2x168x84xf32, #tpu.memory_space<vmem>>, %arg6: memref<5x84x160xf32, #tpu.memory_space<vmem>>, %arg7: memref<1x160xf32, #tpu.memory_space<vmem>>, %arg8: memref<2x5x10xf32, #tpu.memory_space<vmem>>, %arg9: memref<2x160x80xf32, #tpu.memory_space<vmem>>, %arg10: memref<5x80x32xf32, #tpu.memory_space<vmem>>, %arg11: memref<1x32xf32, #tpu.memory_space<vmem>>, %arg12: memref<32x2xf32, #tpu.memory_space<vmem>>, %arg13: memref<1x2xf32, #tpu.memory_space<vmem>>, %arg14: memref<1x1x2xf32, #tpu.memory_space<vmem>>, %arg15: memref<14x84xf32, #tpu.memory_space<vmem>>, %arg16: memref<5x80xf32, #tpu.memory_space<vmem>>) attributes {dimension_semantics = [#tpu.dimension_semantics<parallel>], iteration_bounds = array<i64: 2>, scalar_prefetch = 0 : i64, scratch_operands = 2 : i64, tpu.core_type = #tpu.core_type<tc>, window_params = [{transform_indices = @transform_0, window_bounds = array<i64: 1, 32, 96>}, {pipeline_mode = #tpu.pipeline_mode<synchronous>, transform_indices = @transform_1, window_bounds = array<i64: 5, 96, 168>}, {pipeline_mode = #tpu.pipeline_mode<synchronous>, transform_indices = @transform_2, window_bounds = array<i64: 1, 168>}, {pipeline_mode = #tpu.pipeline_mode<synchronous>, transform_indices = @transform_3, window_bounds = array<i64: 2, 14, 28>}, {pipeline_mode = #tpu.pipeline_mode<synchronous>, transform_indices = @transform_4, window_bounds = array<i64: 2, 168, 84>}, {pipeline_mode = #tpu.pipeline_mode<synchronous>, transform_indices = @transform_5, window_bounds = array<i64: 5, 84, 160>}, {pipeline_mode = #tpu.pipeline_mode<synchronous>, transform_indices = @transform_6, window_bounds = array<i64: 1, 160>}, {pipeline_mode = #tpu.pipeline_mode<synchronous>, transform_indices = @transform_7, window_bounds = array<i64: 2, 5, 10>}, {pipeline_mode = #tpu.pipeline_mode<synchronous>, transform_indices = @transform_8, window_bounds = array<i64: 2, 160, 80>}, {pipeline_mode = #tpu.pipeline_mode<synchronous>, transform_indices = @transform_9, window_bounds = array<i64: 5, 80, 32>}, {pipeline_mode = #tpu.pipeline_mode<synchronous>, transform_indices = @transform_10, window_bounds = array<i64: 1, 32>}, {pipeline_mode = #tpu.pipeline_mode<synchronous>, transform_indices = @transform_11, window_bounds = array<i64: 32, 2>}, {pipeline_mode = #tpu.pipeline_mode<synchronous>, transform_indices = @transform_12, window_bounds = array<i64: 1, 2>}, {transform_indices = @transform_13, window_bounds = array<i64: 1, 1, 2>}]} {
    %c0 = arith.constant 0 : index
    %c0_0 = arith.constant 0 : index
    %c0_1 = arith.constant 0 : index
    %0 = vector.load %arg1[%c0, %c0_0, %c0_1] : memref<1x32x96xf32, #tpu.memory_space<vmem>>, vector<1x28x96xf32>
    %1 = vector.shape_cast %0 : vector<1x28x96xf32> to vector<28x96xf32>
    %c0_2 = arith.constant 0 : index
    %c0_3 = arith.constant 0 : index
    %c0_4 = arith.constant 0 : index
    %2 = vector.load %arg2[%c0_2, %c0_3, %c0_4] : memref<5x96x168xf32, #tpu.memory_space<vmem>>, vector<1x96x168xf32>
    %3 = vector.shape_cast %2 : vector<1x96x168xf32> to vector<96x168xf32>
    %cst = arith.constant dense<0.000000e+00> : vector<28x168xf32>
    %4 = tpu.matmul %1, %3, %cst {dimension_numbers = #tpu.dot_dimension_numbers<[1], [0], [0], [1], [0, 0, 1, 1], [], []>} : vector<28x96xf32>, vector<96x168xf32>, vector<28x168xf32> -> vector<28x168xf32>
    %c0_5 = arith.constant 0 : index
    %c1 = arith.constant 1 : index
    %c0_6 = arith.constant 0 : index
    %5 = vector.load %arg1[%c0_5, %c1, %c0_6] : memref<1x32x96xf32, #tpu.memory_space<vmem>>, vector<1x28x96xf32>
    %6 = vector.shape_cast %5 : vector<1x28x96xf32> to vector<28x96xf32>
    %c1_7 = arith.constant 1 : index
    %c0_8 = arith.constant 0 : index
    %c0_9 = arith.constant 0 : index
    %7 = vector.load %arg2[%c1_7, %c0_8, %c0_9] : memref<5x96x168xf32, #tpu.memory_space<vmem>>, vector<1x96x168xf32>
    %8 = vector.shape_cast %7 : vector<1x96x168xf32> to vector<96x168xf32>
    %cst_10 = arith.constant dense<0.000000e+00> : vector<28x168xf32>
    %9 = tpu.matmul %6, %8, %cst_10 {dimension_numbers = #tpu.dot_dimension_numbers<[1], [0], [0], [1], [0, 0, 1, 1], [], []>} : vector<28x96xf32>, vector<96x168xf32>, vector<28x168xf32> -> vector<28x168xf32>
    %10 = arith.addf %4, %9 : vector<28x168xf32>
    %c0_11 = arith.constant 0 : index
    %c2 = arith.constant 2 : index
    %c0_12 = arith.constant 0 : index
    %11 = vector.load %arg1[%c0_11, %c2, %c0_12] : memref<1x32x96xf32, #tpu.memory_space<vmem>>, vector<1x28x96xf32>
    %12 = vector.shape_cast %11 : vector<1x28x96xf32> to vector<28x96xf32>
    %c2_13 = arith.constant 2 : index
    %c0_14 = arith.constant 0 : index
    %c0_15 = arith.constant 0 : index
    %13 = vector.load %arg2[%c2_13, %c0_14, %c0_15] : memref<5x96x168xf32, #tpu.memory_space<vmem>>, vector<1x96x168xf32>
    %14 = vector.shape_cast %13 : vector<1x96x168xf32> to vector<96x168xf32>
    %cst_16 = arith.constant dense<0.000000e+00> : vector<28x168xf32>
    %15 = tpu.matmul %12, %14, %cst_16 {dimension_numbers = #tpu.dot_dimension_numbers<[1], [0], [0], [1], [0, 0, 1, 1], [], []>} : vector<28x96xf32>, vector<96x168xf32>, vector<28x168xf32> -> vector<28x168xf32>
    %16 = arith.addf %10, %15 : vector<28x168xf32>
    %c0_17 = arith.constant 0 : index
    %c3 = arith.constant 3 : index
    %c0_18 = arith.constant 0 : index
    %17 = vector.load %arg1[%c0_17, %c3, %c0_18] : memref<1x32x96xf32, #tpu.memory_space<vmem>>, vector<1x28x96xf32>
    %18 = vector.shape_cast %17 : vector<1x28x96xf32> to vector<28x96xf32>
    %c3_19 = arith.constant 3 : index
    %c0_20 = arith.constant 0 : index
    %c0_21 = arith.constant 0 : index
    %19 = vector.load %arg2[%c3_19, %c0_20, %c0_21] : memref<5x96x168xf32, #tpu.memory_space<vmem>>, vector<1x96x168xf32>
    %20 = vector.shape_cast %19 : vector<1x96x168xf32> to vector<96x168xf32>
    %cst_22 = arith.constant dense<0.000000e+00> : vector<28x168xf32>
    %21 = tpu.matmul %18, %20, %cst_22 {dimension_numbers = #tpu.dot_dimension_numbers<[1], [0], [0], [1], [0, 0, 1, 1], [], []>} : vector<28x96xf32>, vector<96x168xf32>, vector<28x168xf32> -> vector<28x168xf32>
    %22 = arith.addf %16, %21 : vector<28x168xf32>
    %c0_23 = arith.constant 0 : index
    %c4 = arith.constant 4 : index
    %c0_24 = arith.constant 0 : index
    %23 = vector.load %arg1[%c0_23, %c4, %c0_24] : memref<1x32x96xf32, #tpu.memory_space<vmem>>, vector<1x28x96xf32>
    %24 = vector.shape_cast %23 : vector<1x28x96xf32> to vector<28x96xf32>
    %c4_25 = arith.constant 4 : index
    %c0_26 = arith.constant 0 : index
    %c0_27 = arith.constant 0 : index
    %25 = vector.load %arg2[%c4_25, %c0_26, %c0_27] : memref<5x96x168xf32, #tpu.memory_space<vmem>>, vector<1x96x168xf32>
    %26 = vector.shape_cast %25 : vector<1x96x168xf32> to vector<96x168xf32>
    %cst_28 = arith.constant dense<0.000000e+00> : vector<28x168xf32>
    %27 = tpu.matmul %24, %26, %cst_28 {dimension_numbers = #tpu.dot_dimension_numbers<[1], [0], [0], [1], [0, 0, 1, 1], [], []>} : vector<28x96xf32>, vector<96x168xf32>, vector<28x168xf32> -> vector<28x168xf32>
    %28 = arith.addf %22, %27 : vector<28x168xf32>
    %c0_29 = arith.constant 0 : index
    %c0_30 = arith.constant 0 : index
    %29 = vector.load %arg3[%c0_29, %c0_30] : memref<1x168xf32, #tpu.memory_space<vmem>>, vector<1x168xf32>
    %30 = vector.broadcast %29 : vector<1x168xf32> to vector<28x168xf32>
    %31 = arith.addf %28, %30 : vector<28x168xf32>
    %cst_31 = arith.constant 0.000000e+00 : f32
    %32 = vector.broadcast %cst_31 : f32 to vector<28x168xf32>
    %33 = arith.maximumf %31, %32 : vector<28x168xf32>
    %c0_32 = arith.constant 0 : index
    %c0_33 = arith.constant 0 : index
    %c0_34 = arith.constant 0 : index
    %34 = vector.load %arg4[%c0_32, %c0_33, %c0_34] : memref<2x14x28xf32, #tpu.memory_space<vmem>>, vector<1x14x28xf32>
    %35 = vector.shape_cast %34 : vector<1x14x28xf32> to vector<14x28xf32>
    %cst_35 = arith.constant dense<0.000000e+00> : vector<14x168xf32>
    %36 = tpu.matmul %35, %33, %cst_35 {dimension_numbers = #tpu.dot_dimension_numbers<[1], [0], [0], [1], [0, 0, 1, 1], [], []>} : vector<14x28xf32>, vector<28x168xf32>, vector<14x168xf32> -> vector<14x168xf32>
    %c1_36 = arith.constant 1 : index
    %c0_37 = arith.constant 0 : index
    %c0_38 = arith.constant 0 : index
    %37 = vector.load %arg4[%c1_36, %c0_37, %c0_38] : memref<2x14x28xf32, #tpu.memory_space<vmem>>, vector<1x14x28xf32>
    %38 = vector.shape_cast %37 : vector<1x14x28xf32> to vector<14x28xf32>
    %cst_39 = arith.constant dense<0.000000e+00> : vector<14x168xf32>
    %39 = tpu.matmul %38, %33, %cst_39 {dimension_numbers = #tpu.dot_dimension_numbers<[1], [0], [0], [1], [0, 0, 1, 1], [], []>} : vector<14x28xf32>, vector<28x168xf32>, vector<14x168xf32> -> vector<14x168xf32>
    %40 = arith.maximumf %36, %39 : vector<14x168xf32>
    %c0_40 = arith.constant 0 : index
    %c0_41 = arith.constant 0 : index
    %c0_42 = arith.constant 0 : index
    %41 = vector.load %arg5[%c0_40, %c0_41, %c0_42] : memref<2x168x84xf32, #tpu.memory_space<vmem>>, vector<1x168x84xf32>
    %42 = vector.shape_cast %41 : vector<1x168x84xf32> to vector<168x84xf32>
    %cst_43 = arith.constant dense<0.000000e+00> : vector<14x84xf32>
    %43 = tpu.matmul %40, %42, %cst_43 {dimension_numbers = #tpu.dot_dimension_numbers<[1], [0], [0], [1], [0, 0, 1, 1], [], []>} : vector<14x168xf32>, vector<168x84xf32>, vector<14x84xf32> -> vector<14x84xf32>
    %c1_44 = arith.constant 1 : index
    %c0_45 = arith.constant 0 : index
    %c0_46 = arith.constant 0 : index
    %44 = vector.load %arg5[%c1_44, %c0_45, %c0_46] : memref<2x168x84xf32, #tpu.memory_space<vmem>>, vector<1x168x84xf32>
    %45 = vector.shape_cast %44 : vector<1x168x84xf32> to vector<168x84xf32>
    %cst_47 = arith.constant dense<0.000000e+00> : vector<14x84xf32>
    %46 = tpu.matmul %40, %45, %cst_47 {dimension_numbers = #tpu.dot_dimension_numbers<[1], [0], [0], [1], [0, 0, 1, 1], [], []>} : vector<14x168xf32>, vector<168x84xf32>, vector<14x84xf32> -> vector<14x84xf32>
    %47 = arith.maximumf %43, %46 : vector<14x84xf32>
    %c0_48 = arith.constant 0 : index
    %c0_49 = arith.constant 0 : index
    %48 = vector.load %arg15[%c0_48, %c0_49] : memref<14x84xf32, #tpu.memory_space<vmem>>, vector<14x84xf32>
    tpu.vector_store %arg15[%c0_48, %c0_49], %47 {strides = array<i32>} : memref<14x84xf32, #tpu.memory_space<vmem>>, vector<14x84xf32>,
    %c0_50 = arith.constant 0 : index
    %c0_51 = arith.constant 0 : index
    %49 = vector.load %arg15[%c0_50, %c0_51] : memref<14x84xf32, #tpu.memory_space<vmem>>, vector<10x84xf32>
    %c0_52 = arith.constant 0 : index
    %c0_53 = arith.constant 0 : index
    %c0_54 = arith.constant 0 : index
    %50 = vector.load %arg6[%c0_52, %c0_53, %c0_54] : memref<5x84x160xf32, #tpu.memory_space<vmem>>, vector<1x84x160xf32>
    %51 = vector.shape_cast %50 : vector<1x84x160xf32> to vector<84x160xf32>
    %cst_55 = arith.constant dense<0.000000e+00> : vector<10x160xf32>
    %52 = tpu.matmul %49, %51, %cst_55 {dimension_numbers = #tpu.dot_dimension_numbers<[1], [0], [0], [1], [0, 0, 1, 1], [], []>} : vector<10x84xf32>, vector<84x160xf32>, vector<10x160xf32> -> vector<10x160xf32>
    %c1_56 = arith.constant 1 : index
    %c0_57 = arith.constant 0 : index
    %53 = vector.load %arg15[%c1_56, %c0_57] : memref<14x84xf32, #tpu.memory_space<vmem>>, vector<10x84xf32>
    %c1_58 = arith.constant 1 : index
    %c0_59 = arith.constant 0 : index
    %c0_60 = arith.constant 0 : index
    %54 = vector.load %arg6[%c1_58, %c0_59, %c0_60] : memref<5x84x160xf32, #tpu.memory_space<vmem>>, vector<1x84x160xf32>
    %55 = vector.shape_cast %54 : vector<1x84x160xf32> to vector<84x160xf32>
    %cst_61 = arith.constant dense<0.000000e+00> : vector<10x160xf32>
    %56 = tpu.matmul %53, %55, %cst_61 {dimension_numbers = #tpu.dot_dimension_numbers<[1], [0], [0], [1], [0, 0, 1, 1], [], []>} : vector<10x84xf32>, vector<84x160xf32>, vector<10x160xf32> -> vector<10x160xf32>
    %57 = arith.addf %52, %56 : vector<10x160xf32>
    %c2_62 = arith.constant 2 : index
    %c0_63 = arith.constant 0 : index
    %58 = vector.load %arg15[%c2_62, %c0_63] : memref<14x84xf32, #tpu.memory_space<vmem>>, vector<10x84xf32>
    %c2_64 = arith.constant 2 : index
    %c0_65 = arith.constant 0 : index
    %c0_66 = arith.constant 0 : index
    %59 = vector.load %arg6[%c2_64, %c0_65, %c0_66] : memref<5x84x160xf32, #tpu.memory_space<vmem>>, vector<1x84x160xf32>
    %60 = vector.shape_cast %59 : vector<1x84x160xf32> to vector<84x160xf32>
    %cst_67 = arith.constant dense<0.000000e+00> : vector<10x160xf32>
    %61 = tpu.matmul %58, %60, %cst_67 {dimension_numbers = #tpu.dot_dimension_numbers<[1], [0], [0], [1], [0, 0, 1, 1], [], []>} : vector<10x84xf32>, vector<84x160xf32>, vector<10x160xf32> -> vector<10x160xf32>
    %62 = arith.addf %57, %61 : vector<10x160xf32>
    %c3_68 = arith.constant 3 : index
    %c0_69 = arith.constant 0 : index
    %63 = vector.load %arg15[%c3_68, %c0_69] : memref<14x84xf32, #tpu.memory_space<vmem>>, vector<10x84xf32>
    %c3_70 = arith.constant 3 : index
    %c0_71 = arith.constant 0 : index
    %c0_72 = arith.constant 0 : index
    %64 = vector.load %arg6[%c3_70, %c0_71, %c0_72] : memref<5x84x160xf32, #tpu.memory_space<vmem>>, vector<1x84x160xf32>
    %65 = vector.shape_cast %64 : vector<1x84x160xf32> to vector<84x160xf32>
    %cst_73 = arith.constant dense<0.000000e+00> : vector<10x160xf32>
    %66 = tpu.matmul %63, %65, %cst_73 {dimension_numbers = #tpu.dot_dimension_numbers<[1], [0], [0], [1], [0, 0, 1, 1], [], []>} : vector<10x84xf32>, vector<84x160xf32>, vector<10x160xf32> -> vector<10x160xf32>
    %67 = arith.addf %62, %66 : vector<10x160xf32>
    %c4_74 = arith.constant 4 : index
    %c0_75 = arith.constant 0 : index
    %68 = vector.load %arg15[%c4_74, %c0_75] : memref<14x84xf32, #tpu.memory_space<vmem>>, vector<10x84xf32>
    %c4_76 = arith.constant 4 : index
    %c0_77 = arith.constant 0 : index
    %c0_78 = arith.constant 0 : index
    %69 = vector.load %arg6[%c4_76, %c0_77, %c0_78] : memref<5x84x160xf32, #tpu.memory_space<vmem>>, vector<1x84x160xf32>
    %70 = vector.shape_cast %69 : vector<1x84x160xf32> to vector<84x160xf32>
    %cst_79 = arith.constant dense<0.000000e+00> : vector<10x160xf32>
    %71 = tpu.matmul %68, %70, %cst_79 {dimension_numbers = #tpu.dot_dimension_numbers<[1], [0], [0], [1], [0, 0, 1, 1], [], []>} : vector<10x84xf32>, vector<84x160xf32>, vector<10x160xf32> -> vector<10x160xf32>
    %72 = arith.addf %67, %71 : vector<10x160xf32>
    %c0_80 = arith.constant 0 : index
    %c0_81 = arith.constant 0 : index
    %73 = vector.load %arg7[%c0_80, %c0_81] : memref<1x160xf32, #tpu.memory_space<vmem>>, vector<1x160xf32>
    %74 = vector.broadcast %73 : vector<1x160xf32> to vector<10x160xf32>
    %75 = arith.addf %72, %74 : vector<10x160xf32>
    %cst_82 = arith.constant 0.000000e+00 : f32
    %76 = vector.broadcast %cst_82 : f32 to vector<10x160xf32>
    %77 = arith.maximumf %75, %76 : vector<10x160xf32>
    %c0_83 = arith.constant 0 : index
    %c0_84 = arith.constant 0 : index
    %c0_85 = arith.constant 0 : index
    %78 = vector.load %arg8[%c0_83, %c0_84, %c0_85] : memref<2x5x10xf32, #tpu.memory_space<vmem>>, vector<1x5x10xf32>
    %79 = vector.shape_cast %78 : vector<1x5x10xf32> to vector<5x10xf32>
    %cst_86 = arith.constant dense<0.000000e+00> : vector<5x160xf32>
    %80 = tpu.matmul %79, %77, %cst_86 {dimension_numbers = #tpu.dot_dimension_numbers<[1], [0], [0], [1], [0, 0, 1, 1], [], []>} : vector<5x10xf32>, vector<10x160xf32>, vector<5x160xf32> -> vector<5x160xf32>
    %c1_87 = arith.constant 1 : index
    %c0_88 = arith.constant 0 : index
    %c0_89 = arith.constant 0 : index
    %81 = vector.load %arg8[%c1_87, %c0_88, %c0_89] : memref<2x5x10xf32, #tpu.memory_space<vmem>>, vector<1x5x10xf32>
    %82 = vector.shape_cast %81 : vector<1x5x10xf32> to vector<5x10xf32>
    %cst_90 = arith.constant dense<0.000000e+00> : vector<5x160xf32>
    %83 = tpu.matmul %82, %77, %cst_90 {dimension_numbers = #tpu.dot_dimension_numbers<[1], [0], [0], [1], [0, 0, 1, 1], [], []>} : vector<5x10xf32>, vector<10x160xf32>, vector<5x160xf32> -> vector<5x160xf32>
    %84 = arith.maximumf %80, %83 : vector<5x160xf32>
    %c0_91 = arith.constant 0 : index
    %c0_92 = arith.constant 0 : index
    %c0_93 = arith.constant 0 : index
    %85 = vector.load %arg9[%c0_91, %c0_92, %c0_93] : memref<2x160x80xf32, #tpu.memory_space<vmem>>, vector<1x160x80xf32>
    %86 = vector.shape_cast %85 : vector<1x160x80xf32> to vector<160x80xf32>
    %cst_94 = arith.constant dense<0.000000e+00> : vector<5x80xf32>
    %87 = tpu.matmul %84, %86, %cst_94 {dimension_numbers = #tpu.dot_dimension_numbers<[1], [0], [0], [1], [0, 0, 1, 1], [], []>} : vector<5x160xf32>, vector<160x80xf32>, vector<5x80xf32> -> vector<5x80xf32>
    %c1_95 = arith.constant 1 : index
    %c0_96 = arith.constant 0 : index
    %c0_97 = arith.constant 0 : index
    %88 = vector.load %arg9[%c1_95, %c0_96, %c0_97] : memref<2x160x80xf32, #tpu.memory_space<vmem>>, vector<1x160x80xf32>
    %89 = vector.shape_cast %88 : vector<1x160x80xf32> to vector<160x80xf32>
    %cst_98 = arith.constant dense<0.000000e+00> : vector<5x80xf32>
    %90 = tpu.matmul %84, %89, %cst_98 {dimension_numbers = #tpu.dot_dimension_numbers<[1], [0], [0], [1], [0, 0, 1, 1], [], []>} : vector<5x160xf32>, vector<160x80xf32>, vector<5x80xf32> -> vector<5x80xf32>
    %91 = arith.maximumf %87, %90 : vector<5x80xf32>
    %c0_99 = arith.constant 0 : index
    %c0_100 = arith.constant 0 : index
    %92 = vector.load %arg16[%c0_99, %c0_100] : memref<5x80xf32, #tpu.memory_space<vmem>>, vector<5x80xf32>
    tpu.vector_store %arg16[%c0_99, %c0_100], %91 {strides = array<i32>} : memref<5x80xf32, #tpu.memory_space<vmem>>, vector<5x80xf32>,
    %c0_101 = arith.constant 0 : index
    %c0_102 = arith.constant 0 : index
    %93 = vector.load %arg11[%c0_101, %c0_102] : memref<1x32xf32, #tpu.memory_space<vmem>>, vector<1x32xf32>
    %c0_103 = arith.constant 0 : index
    %c0_104 = arith.constant 0 : index
    %94 = vector.load %arg16[%c0_103, %c0_104] : memref<5x80xf32, #tpu.memory_space<vmem>>, vector<1x80xf32>
    %c0_105 = arith.constant 0 : index
    %c0_106 = arith.constant 0 : index
    %c0_107 = arith.constant 0 : index
    %95 = vector.load %arg10[%c0_105, %c0_106, %c0_107] : memref<5x80x32xf32, #tpu.memory_space<vmem>>, vector<1x80x32xf32>
    %96 = vector.shape_cast %95 : vector<1x80x32xf32> to vector<80x32xf32>
    %cst_108 = arith.constant dense<0.000000e+00> : vector<1x32xf32>
    %97 = tpu.matmul %94, %96, %cst_108 {dimension_numbers = #tpu.dot_dimension_numbers<[1], [0], [0], [1], [0, 0, 1, 1], [], []>} : vector<1x80xf32>, vector<80x32xf32>, vector<1x32xf32> -> vector<1x32xf32>
    %98 = arith.addf %93, %97 : vector<1x32xf32>
    %c1_109 = arith.constant 1 : index
    %c0_110 = arith.constant 0 : index
    %99 = vector.load %arg16[%c1_109, %c0_110] : memref<5x80xf32, #tpu.memory_space<vmem>>, vector<1x80xf32>
    %c1_111 = arith.constant 1 : index
    %c0_112 = arith.constant 0 : index
    %c0_113 = arith.constant 0 : index
    %100 = vector.load %arg10[%c1_111, %c0_112, %c0_113] : memref<5x80x32xf32, #tpu.memory_space<vmem>>, vector<1x80x32xf32>
    %101 = vector.shape_cast %100 : vector<1x80x32xf32> to vector<80x32xf32>
    %cst_114 = arith.constant dense<0.000000e+00> : vector<1x32xf32>
    %102 = tpu.matmul %99, %101, %cst_114 {dimension_numbers = #tpu.dot_dimension_numbers<[1], [0], [0], [1], [0, 0, 1, 1], [], []>} : vector<1x80xf32>, vector<80x32xf32>, vector<1x32xf32> -> vector<1x32xf32>
    %103 = arith.addf %98, %102 : vector<1x32xf32>
    %c2_115 = arith.constant 2 : index
    %c0_116 = arith.constant 0 : index
    %104 = vector.load %arg16[%c2_115, %c0_116] : memref<5x80xf32, #tpu.memory_space<vmem>>, vector<1x80xf32>
    %c2_117 = arith.constant 2 : index
    %c0_118 = arith.constant 0 : index
    %c0_119 = arith.constant 0 : index
    %105 = vector.load %arg10[%c2_117, %c0_118, %c0_119] : memref<5x80x32xf32, #tpu.memory_space<vmem>>, vector<1x80x32xf32>
    %106 = vector.shape_cast %105 : vector<1x80x32xf32> to vector<80x32xf32>
    %cst_120 = arith.constant dense<0.000000e+00> : vector<1x32xf32>
    %107 = tpu.matmul %104, %106, %cst_120 {dimension_numbers = #tpu.dot_dimension_numbers<[1], [0], [0], [1], [0, 0, 1, 1], [], []>} : vector<1x80xf32>, vector<80x32xf32>, vector<1x32xf32> -> vector<1x32xf32>
    %108 = arith.addf %103, %107 : vector<1x32xf32>
    %c3_121 = arith.constant 3 : index
    %c0_122 = arith.constant 0 : index
    %109 = vector.load %arg16[%c3_121, %c0_122] : memref<5x80xf32, #tpu.memory_space<vmem>>, vector<1x80xf32>
    %c3_123 = arith.constant 3 : index
    %c0_124 = arith.constant 0 : index
    %c0_125 = arith.constant 0 : index
    %110 = vector.load %arg10[%c3_123, %c0_124, %c0_125] : memref<5x80x32xf32, #tpu.memory_space<vmem>>, vector<1x80x32xf32>
    %111 = vector.shape_cast %110 : vector<1x80x32xf32> to vector<80x32xf32>
    %cst_126 = arith.constant dense<0.000000e+00> : vector<1x32xf32>
    %112 = tpu.matmul %109, %111, %cst_126 {dimension_numbers = #tpu.dot_dimension_numbers<[1], [0], [0], [1], [0, 0, 1, 1], [], []>} : vector<1x80xf32>, vector<80x32xf32>, vector<1x32xf32> -> vector<1x32xf32>
    %113 = arith.addf %108, %112 : vector<1x32xf32>
    %c4_127 = arith.constant 4 : index
    %c0_128 = arith.constant 0 : index
    %114 = vector.load %arg16[%c4_127, %c0_128] : memref<5x80xf32, #tpu.memory_space<vmem>>, vector<1x80xf32>
    %c4_129 = arith.constant 4 : index
    %c0_130 = arith.constant 0 : index
    %c0_131 = arith.constant 0 : index
    %115 = vector.load %arg10[%c4_129, %c0_130, %c0_131] : memref<5x80x32xf32, #tpu.memory_space<vmem>>, vector<1x80x32xf32>
    %116 = vector.shape_cast %115 : vector<1x80x32xf32> to vector<80x32xf32>
    %cst_132 = arith.constant dense<0.000000e+00> : vector<1x32xf32>
    %117 = tpu.matmul %114, %116, %cst_132 {dimension_numbers = #tpu.dot_dimension_numbers<[1], [0], [0], [1], [0, 0, 1, 1], [], []>} : vector<1x80xf32>, vector<80x32xf32>, vector<1x32xf32> -> vector<1x32xf32>
    %118 = arith.addf %113, %117 : vector<1x32xf32>
    %cst_133 = arith.constant 0.000000e+00 : f32
    %119 = vector.broadcast %cst_133 : f32 to vector<1x32xf32>
    %120 = arith.maximumf %118, %119 : vector<1x32xf32>
    %c0_134 = arith.constant 0 : index
    %c0_135 = arith.constant 0 : index
    %121 = vector.load %arg12[%c0_134, %c0_135] : memref<32x2xf32, #tpu.memory_space<vmem>>, vector<32x2xf32>
    %cst_136 = arith.constant dense<0.000000e+00> : vector<1x2xf32>
    %122 = tpu.matmul %120, %121, %cst_136 {dimension_numbers = #tpu.dot_dimension_numbers<[1], [0], [0], [1], [0, 0, 1, 1], [], []>} : vector<1x32xf32>, vector<32x2xf32>, vector<1x2xf32> -> vector<1x2xf32>
    %c0_137 = arith.constant 0 : index
    %c0_138 = arith.constant 0 : index
    %123 = vector.load %arg13[%c0_137, %c0_138] : memref<1x2xf32, #tpu.memory_space<vmem>>, vector<1x2xf32>
    %124 = arith.addf %122, %123 : vector<1x2xf32>
    %c0_139 = arith.constant 0 : index
    %c0_140 = arith.constant 0 : index
    %c0_141 = arith.constant 0 : index
    %125 = vector.load %arg14[%c0_139, %c0_140, %c0_141] : memref<1x1x2xf32, #tpu.memory_space<vmem>>, vector<1x1x2xf32>
    %126 = vector.shape_cast %125 : vector<1x1x2xf32> to vector<1x2xf32>
    %127 = vector.shape_cast %124 : vector<1x2xf32> to vector<1x1x2xf32>
    tpu.vector_store %arg14[%c0_139, %c0_140, %c0_141], %127 {strides = array<i32>} : memref<1x1x2xf32, #tpu.memory_space<vmem>>, vector<1x1x2xf32>,
    return
  }
  func.func @transform_0(%arg0: i32) -> (i32, i32, i32) {
    %c0_i32 = arith.constant 0 : i32
    %c0_i32_0 = arith.constant 0 : i32
    %c0_i32_1 = arith.constant 0 : i32
    return %arg0, %c0_i32, %c0_i32_0 : i32, i32, i32
  }
  func.func @transform_1(%arg0: i32) -> (i32, i32, i32) {
    %c0_i32 = arith.constant 0 : i32
    %c0_i32_0 = arith.constant 0 : i32
    %c0_i32_1 = arith.constant 0 : i32
    %c0_i32_2 = arith.constant 0 : i32
    return %c0_i32, %c0_i32_0, %c0_i32_1 : i32, i32, i32
  }
  func.func @transform_2(%arg0: i32) -> (i32, i32) {
    %c0_i32 = arith.constant 0 : i32
    %c0_i32_0 = arith.constant 0 : i32
    %c0_i32_1 = arith.constant 0 : i32
    return %c0_i32, %c0_i32_0 : i32, i32
  }
  func.func @transform_3(%arg0: i32) -> (i32, i32, i32) {
    %c0_i32 = arith.constant 0 : i32
    %c0_i32_0 = arith.constant 0 : i32
    %c0_i32_1 = arith.constant 0 : i32
    %c0_i32_2 = arith.constant 0 : i32
    return %c0_i32, %c0_i32_0, %c0_i32_1 : i32, i32, i32
  }
  func.func @transform_4(%arg0: i32) -> (i32, i32, i32) {
    %c0_i32 = arith.constant 0 : i32
    %c0_i32_0 = arith.constant 0 : i32
    %c0_i32_1 = arith.constant 0 : i32
    %c0_i32_2 = arith.constant 0 : i32
    return %c0_i32, %c0_i32_0, %c0_i32_1 : i32, i32, i32
  }
  func.func @transform_5(%arg0: i32) -> (i32, i32, i32) {
    %c0_i32 = arith.constant 0 : i32
    %c0_i32_0 = arith.constant 0 : i32
    %c0_i32_1 = arith.constant 0 : i32
    %c0_i32_2 = arith.constant 0 : i32
    return %c0_i32, %c0_i32_0, %c0_i32_1 : i32, i32, i32
  }
  func.func @transform_6(%arg0: i32) -> (i32, i32) {
    %c0_i32 = arith.constant 0 : i32
    %c0_i32_0 = arith.constant 0 : i32
    %c0_i32_1 = arith.constant 0 : i32
    return %c0_i32, %c0_i32_0 : i32, i32
  }
  func.func @transform_7(%arg0: i32) -> (i32, i32, i32) {
    %c0_i32 = arith.constant 0 : i32
    %c0_i32_0 = arith.constant 0 : i32
    %c0_i32_1 = arith.constant 0 : i32
    %c0_i32_2 = arith.constant 0 : i32
    return %c0_i32, %c0_i32_0, %c0_i32_1 : i32, i32, i32
  }
  func.func @transform_8(%arg0: i32) -> (i32, i32, i32) {
    %c0_i32 = arith.constant 0 : i32
    %c0_i32_0 = arith.constant 0 : i32
    %c0_i32_1 = arith.constant 0 : i32
    %c0_i32_2 = arith.constant 0 : i32
    return %c0_i32, %c0_i32_0, %c0_i32_1 : i32, i32, i32
  }
  func.func @transform_9(%arg0: i32) -> (i32, i32, i32) {
    %c0_i32 = arith.constant 0 : i32
    %c0_i32_0 = arith.constant 0 : i32
    %c0_i32_1 = arith.constant 0 : i32
    %c0_i32_2 = arith.constant 0 : i32
    return %c0_i32, %c0_i32_0, %c0_i32_1 : i32, i32, i32
  }
  func.func @transform_10(%arg0: i32) -> (i32, i32) {
    %c0_i32 = arith.constant 0 : i32
    %c0_i32_0 = arith.constant 0 : i32
    %c0_i32_1 = arith.constant 0 : i32
    return %c0_i32, %c0_i32_0 : i32, i32
  }
  func.func @transform_11(%arg0: i32) -> (i32, i32) {
    %c0_i32 = arith.constant 0 : i32
    %c0_i32_0 = arith.constant 0 : i32
    %c0_i32_1 = arith.constant 0 : i32
    return %c0_i32, %c0_i32_0 : i32, i32
  }
  func.func @transform_12(%arg0: i32) -> (i32, i32) {
    %c0_i32 = arith.constant 0 : i32
    %c0_i32_0 = arith.constant 0 : i32
    %c0_i32_1 = arith.constant 0 : i32
    return %c0_i32, %c0_i32_0 : i32, i32
  }
  func.func @transform_13(%arg0: i32) -> (i32, i32, i32) {
    %c0_i32 = arith.constant 0 : i32
    %c0_i32_0 = arith.constant 0 : i32
    %c0_i32_1 = arith.constant 0 : i32
    return %arg0, %c0_i32, %c0_i32_0 : i32, i32, i32
  }
}

</mosaic_0001>

<bundles_post_ra>
// kernel: net_forward.1
= control target key start
LH: loop header
LB: loop body
LE: loop exit
PB: predicated region body
PF: predicated region fallthrough
CT: control target
= control target key end

     0   :  { %18 = vsyncpa [#allocation5], 0  ;;  %s4081_s0 = inlined_call_operand.vmem [shape: f32[2,32,96], index: 0, kind: input, shape index: {}]   ;;  %s4082_s1 = inlined_call_operand.vmem [shape: f32[5,96,168], index: 1, kind: input, shape index: {}]   ;;  %s4083_s2 = inlined_call_operand.vmem [shape: f32[1,168], index: 2, kind: input, shape index: {}]   ;;  %s4084_s3 = inlined_call_operand.vmem [shape: f32[2,14,28], index: 3, kind: input, shape index: {}]   ;;  %s4085_s4 = inlined_call_operand.vmem [shape: f32[2,168,84], index: 4, kind: input, shape index: {}]   ;;  %s4086_s5 = inlined_call_operand.vmem [shape: f32[5,84,160], index: 5, kind: input, shape index: {}]   ;;  %s4087_s6 = inlined_call_operand.vmem [shape: f32[1,160], index: 6, kind: input, shape index: {}]   ;;  %s4088_s7 = inlined_call_operand.vmem [shape: f32[2,5,10], index: 7, kind: input, shape index: {}]   ;;  %s4089_s8 = inlined_call_operand.vmem [shape: f32[2,160,80], index: 8, kind: input, shape index: {}]   ;;  %s4090_s9 = inlined_call_operand.vmem [shape: f32[5,80,32], index: 9, kind: input, shape index: {}]   ;;  %s4091_s10 = inlined_call_operand.vmem [shape: f32[1,32], index: 10, kind: input, shape index: {}]   ;;  %s4092_s11 = inlined_call_operand.vmem [shape: f32[32,2], index: 11, kind: input, shape index: {}]   ;;  %s4093_s12 = inlined_call_operand.vmem [shape: f32[1,2], index: 12, kind: input, shape index: {}]   ;;  %s4094_s13 = inlined_call_operand.hbm [shape: f32[2,1,2], index: 13, kind: output, shape index: {}]  }
   0x1   :  { %20 = vsyncpa [#allocation5 + $0x1], 0  ;;  %s2747_s25 = smov 0   ;;  %s2749_s26 = smov 0  }
   0x2   :  { %s2751_s27 = smov 0   ;;  %s2753_s28 = smov 0  }
   0x3 LB: > { %4099 = sst [smem:[#allocation7_spill]] %s2671_s27  ;;  %s2768_s29 = sadd.s32 4294967295, %s2675_s28   ;;  %s2675_s28 = sphi %s2753_s28, %s4106_s28   ;;  %s2671_s27 = sphi %s2751_s27, %s4108_s27   ;;  %s2667_s26 = sphi %s2749_s26, %s4110_s26   ;;  %s2663_s25 = sphi %s2747_s25, %s4109_s25  }
   0x4   : > { %s2195_s30 = sadd.s32 4294967294, %s2675_s28   ;;  %s2772_s14 = sadd.s32 1, %s2675_s28  }
   0x5   : > { %4100 = sst [smem:[#allocation8_spill]] %s2772_s14  ;;  %s311_s15 = sadd.s32 1, %s2671_s27 }
   0x6   : > { %s308_s16 = ssub.s32 %s2675_s28, %s2772_s14  ;;  %p321_p0 = scmp.ne.s32.totalorder %s2671_s27, %s2667_s26 }
   0x7   : > { %p309_p1 = scmp.eq.s32.totalorder %s308_s16, 0  ;;  %p322_p2 = scmp.eq.s32.totalorder %s2768_s29, 1 }
   0x8   : > { %p327_p3 = scmp.ne.s32.totalorder %s2667_s26, %s2663_s25  ;;  %p328_p4 = scmp.eq.s32.totalorder %s2195_s30, 1 }
   0x9   : > { %s2783_s17 = scalar_select %p309_p1, %s2671_s27, %s311_s15  }
   0xa   : > { %p2785_p5 = por %p322_p2, %p321_p0  ;;  %p2789_p6 = por %p328_p4, %p327_p3 }
   0xb   : > { %4101 = sst [smem:[#allocation9_spill]] %s2783_s17  ;;  %p2198_p7 = scmp.ge.s32.totalorder %s2675_s28, 1 }
   0xc   : > { %s4103_s19 = scalar_select %p2789_p6, 1, 0 }
   0xd   : > { %p390_p8 = scmp.lt.s32.totalorder %s2675_s28, 3 }
   0xe   : > { %4104 = sst [smem:[#allocation10_spill]] %s4103_s19 }
   0xf   : > { %p391_p9 = pnand %p2198_p7, %p390_p8 }
  0x10   : > { %p433_p10 = scmp.lt.s32.totalorder (!%p391_p9), %s2768_s29, 1  ;;  %s431_s30 = sand.u32 (!%p391_p9), 1, %s2667_s26  }
  0x11   : > { %394 = sbr.rel (%p391_p9) target bundleno = 1327 (0x52f), region = 72  ;;  %s2128_s22 = scalar_lea.sflag (!%p391_p9), [#allocation5], %s431_s30 }
  0x12   : > { %s2633_s15 = scalar_lea.hbm (!%p391_p9), %s4094_s13, 2 }
  0x16   : > { %v2223_v0 = vld [vmem:[%s4082_s1 + $0x170] sm:$0xff]  ;;  %v2224_v1 = vld [vmem:[%s4082_s1 + $0x178] sm:$0xff]  ;;  %v2221_v4 = vld [vmem:[%s4082_s1 + $0x160] sm:$0xff]  ;;  %s2889_s20 = scalar_select %p433_p10, %s2768_s29, 1  ;;  %vm495_vm0 = vcmask 785408   ;;  %vm988_vm1 = vcmask 1043456  }
  0x17   : > { %v464_v2 = vld [vmem:[%s4082_s1 + $0xb0] sm:$0xff]  ;;  %512 = vmatpush.msra.mxu0 %v2223_v0  ;;  %541 = vmatpush.msra.mxu1 %v2224_v1  ;;  %v465_v3 = vld [vmem:[%s4082_s1 + $0xb8] sm:$0xff]  ;;  %v2222_v5 = vld [vmem:[%s4082_s1 + $0x168] sm:$0xff]  ;;  %vm981_vm2 = vcmask 228352   ;;  %vm1121_vm3 = vcmask 326656   ;;  %vm1244_vm4 = vcmask 687104  }
  0x18   : > { %582 = vmatpush.msra.mxu2 %v464_v2  ;;  %611 = vmatpush.msra.mxu3 %v465_v3  ;;  %v462_v6 = vld [vmem:[%s4082_s1 + $0xa0] sm:$0xff]  ;;  %v463_v7 = vld [vmem:[%s4082_s1 + $0xa8] sm:$0xff]  ;;  %v2219_v8 = vld [vmem:[%s4082_s1 + $0x150] sm:$0xff]  ;;  %s2573_s16 = sshll.u32 %s2889_s20, 5  ;;  %vm1246_vm5 = vcmask 685056   ;;  %vm1693_vm6 = vcmask 1041408  }
  0x19   : > { %513 = vmatpush.msra.mxu0 %v2221_v4  ;;  %542 = vmatpush.msra.mxu1 %v2222_v5  ;;  %v2220_v9 = vld [vmem:[%s4082_s1 + $0x158] sm:$0xff]  ;;  %v460_v10 = vld [vmem:[%s4082_s1 + $0x90] sm:$0xff]  ;;  %v2217_v12 = vld [vmem:[%s4082_s1 + $0x140] sm:$0xff]  ;;  %s2937_s19 = scalar_lea.vmem %s4081_s0, %s2573_s16  ;;  %vm1689_vm7 = vcmask 80896   ;;  %vm1807_vm8 = vcmask 261120   ;;  %vm1913_vm9 = vcmask 651264   ;;  %s2136_s16 = scalar_lea.hbm %s4094_s13, %s2768_s29 }
  0x1a   : > { %v461_v11 = vld [vmem:[%s4082_s1 + $0x98] sm:$0xff]  ;;  %583 = vmatpush.msra.mxu2 %v462_v6  ;;  %612 = vmatpush.msra.mxu3 %v463_v7  ;;  %v2218_v13 = vld [vmem:[%s4082_s1 + $0x148] sm:$0xff]  ;;  %v458_v14 = vld [vmem:[%s4082_s1 + $0x80] sm:$0xff]  ;;  %vm1927_vm10 = vcmask 654336   ;;  %s2140_s21 = sshll.u32 %s2136_s16, 4  ;;  %vm2125_vm11 = vcmask 8192   ;;  %s2141_s21 = int_to_ptr.hbm [resolvable:$true] %s2140_s21 }
  0x1b   : > { %514 = vmatpush.msra.mxu0 %v2219_v8  ;;  %543 = vmatpush.msra.mxu1 %v2220_v9  ;;  %v459_v15 = vld [vmem:[%s4082_s1 + $0x88] sm:$0xff]  ;;  %v2215_v16 = vld [vmem:[%s4082_s1 + $0x130] sm:$0xff]  ;;  %v2216_v17 = vld [vmem:[%s4082_s1 + $0x138] sm:$0xff]  ;;  %s2627_s23 = sshra.s32 %s2141_s21, 4  ;;  %s2628_s23 = int_to_ptr.hbm [resolvable:$true] %s2627_s23 }
  0x1c   : > { %584 = vmatpush.msra.mxu2 %v460_v10  ;;  %613 = vmatpush.msra.mxu3 %v461_v11  ;;  %v456_v18 = vld [vmem:[%s4082_s1 + $0x70] sm:$0xff]  ;;  %v457_v19 = vld [vmem:[%s4082_s1 + $0x78] sm:$0xff]  ;;  %v2213_v20 = vld [vmem:[%s4082_s1 + $0x120] sm:$0xff]  ;;  %s2629_s24 = scalar_lea.hbm %s2628_s23, 1  ;;  %p2634_p0 = scmp.lt.s32.totalorder %s2628_s23, %s4094_s13 }
  0x1d   : > { %515 = vmatpush.msra.mxu0 %v2217_v12  ;;  %544 = vmatpush.msra.mxu1 %v2218_v13  ;;  %v2214_v21 = vld [vmem:[%s4082_s1 + $0x128] sm:$0xff]  ;;  %v454_v22 = vld [vmem:[%s4082_s1 + $0x60] sm:$0xff]  ;;  %v2211_v24 = vld [vmem:[%s4082_s1 + $0x110] sm:$0xff]  ;;  %p2630_p11 = scmp.ne.s32.totalorder %s2628_s23, %s2629_s24  ;;  %p2635_p1 = scmp.lt.s32.totalorder %s2633_s15, %s2629_s24 }
  0x1e   : > { %585 = vmatpush.msra.mxu2 %v458_v14  ;;  %614 = vmatpush.msra.mxu3 %v459_v15  ;;  %v455_v23 = vld [vmem:[%s4082_s1 + $0x68] sm:$0xff]  ;;  %v2212_v25 = vld [vmem:[%s4082_s1 + $0x118] sm:$0xff]  ;;  %v452_v26 = vld [vmem:[%s4082_s1 + $0x50] sm:$0xff] }
  0x1f   : > { %516 = vmatpush.msra.mxu0 %v2215_v16  ;;  %545 = vmatpush.msra.mxu1 %v2216_v17  ;;  %v453_v27 = vld [vmem:[%s4082_s1 + $0x58] sm:$0xff]  ;;  %v2209_v28 = vld [vmem:[%s4082_s1 + $0x100] sm:$0xff]  ;;  %v2210_v29 = vld [vmem:[%s4082_s1 + $0x108] sm:$0xff]  ;;  %p2631_p12 = pnand %p2630_p11, %p2785_p5  ;;  %p2636_p2 = por %p2635_p1, %p2634_p0 }
  0x20   : > { %586 = vmatpush.msra.mxu2 %v456_v18  ;;  %615 = vmatpush.msra.mxu3 %v457_v19  ;;  %v450_v30 = vld [vmem:[%s4082_s1 + $0x40] sm:$0xff]  ;;  %v451_v31 = vld [vmem:[%s4082_s1 + $0x48] sm:$0xff]  ;;  %v2207_v32 = vld [vmem:[%s4082_s1 + $0xf0] sm:$0xff] }
  0x21   : > { %517 = vmatpush.msra.mxu0 %v2213_v20  ;;  %546 = vmatpush.msra.mxu1 %v2214_v21  ;;  %v2208_v33 = vld [vmem:[%s4082_s1 + $0xf8] sm:$0xff]  ;;  %v448_v34 = vld [vmem:[%s4082_s1 + $0x30] sm:$0xff]  ;;  %v2205_v36 = vld [vmem:[%s4082_s1 + $0xe0] sm:$0xff]  ;;  %p2632_p13 = pneg %p2631_p12 }
  0x22   : > { %587 = vmatpush.msra.mxu2 %v454_v22  ;;  %616 = vmatpush.msra.mxu3 %v455_v23  ;;  %v449_v35 = vld [vmem:[%s4082_s1 + $0x38] sm:$0xff]  ;;  %v2206_v37 = vld [vmem:[%s4082_s1 + $0xe8] sm:$0xff]  ;;  %v446_v38 = vld [vmem:[%s4082_s1 + $0x20] sm:$0xff] }
  0x23   : > { %518 = vmatpush.msra.mxu0 %v2211_v24  ;;  %547 = vmatpush.msra.mxu1 %v2212_v25  ;;  %v447_v39 = vld [vmem:[%s4082_s1 + $0x28] sm:$0xff]  ;;  %v2203_v40 = vld [vmem:[%s4082_s1 + $0xd0] sm:$0xff]  ;;  %v2204_v41 = vld [vmem:[%s4082_s1 + $0xd8] sm:$0xff]  ;;  %p2637_p3 = pnand %p2636_p2, %p2632_p13 }
  0x24   : > { %588 = vmatpush.msra.mxu2 %v452_v26  ;;  %617 = vmatpush.msra.mxu3 %v453_v27  ;;  %v444_v42 = vld [vmem:[%s4082_s1 + $0x10] sm:$0xff]  ;;  %v445_v43 = vld [vmem:[%s4082_s1 + $0x18] sm:$0xff]  ;;  %v2201_v44 = vld [vmem:[%s4082_s1 + $0xc0] sm:$0xff] }
  0x25   : > { %519 = vmatpush.msra.mxu0 %v2209_v28  ;;  %548 = vmatpush.msra.mxu1 %v2210_v29  ;;  %v2202_v45 = vld [vmem:[%s4082_s1 + $0xc8] sm:$0xff]  ;;  %v442_v46 = vld [vmem:[%s4082_s1] sm:$0xff]  ;;  %v2263_v50 = vld [vmem:[%s4082_s1 + $0x230] sm:$0xff] }
  0x26   : > { %589 = vmatpush.msra.mxu2 %v450_v30  ;;  %618 = vmatpush.msra.mxu3 %v451_v31  ;;  %v443_v47 = vld [vmem:[%s4082_s1 + $0x8] sm:$0xff]  ;;  %v438_v49 = vld [vmem:[%s2937_s19] sm:$0xff]  ;;  %v2264_v51 = vld [vmem:[%s4082_s1 + $0x238] sm:$0xff] }
  0x27   : > { %520 = vmatpush.msra.mxu0 %v2207_v32  ;;  %549 = vmatpush.msra.mxu1 %v2208_v33  ;;  %v466_v48 = vld [vmem:[%s2937_s19 + $0x1] sm:$0xff]  ;;  %v2295_v52 = vld [vmem:[%s4082_s1 + $0x2f0] sm:$0xff]  ;;  %v2296_v53 = vld [vmem:[%s4082_s1 + $0x2f8] sm:$0xff] }
  0x28   : > { %590 = vmatpush.msra.mxu2 %v448_v34  ;;  %619 = vmatpush.msra.mxu3 %v449_v35  ;;  %v2261_v54 = vld [vmem:[%s4082_s1 + $0x220] sm:$0xff]  ;;  %v2262_v55 = vld [vmem:[%s4082_s1 + $0x228] sm:$0xff]  ;;  %v2259_v58 = vld [vmem:[%s4082_s1 + $0x210] sm:$0xff] }
  0x29   : > { %521 = vmatpush.msra.mxu0 %v2205_v36  ;;  %550 = vmatpush.msra.mxu1 %v2206_v37  ;;  %v2293_v56 = vld [vmem:[%s4082_s1 + $0x2e0] sm:$0xff]  ;;  %v2294_v57 = vld [vmem:[%s4082_s1 + $0x2e8] sm:$0xff]  ;;  %v2260_v59 = vld [vmem:[%s4082_s1 + $0x218] sm:$0xff] }
  0x2a   : > { %591 = vmatpush.msra.mxu2 %v446_v38  ;;  %620 = vmatpush.msra.mxu3 %v447_v39  ;;  %v2291_v60 = vld [vmem:[%s4082_s1 + $0x2d0] sm:$0xff]  ;;  %v2292_v61 = vld [vmem:[%s4082_s1 + $0x2d8] sm:$0xff]  ;;  %v439_v63 = vld [vmem:[%s2937_s19 + $0x8] sm:$0xff] }
  0x2b   : > { %522 = vmatpush.msra.mxu0 %v2203_v40  ;;  %551 = vmatpush.msra.mxu1 %v2204_v41  ;;  %v467_v62 = vld [vmem:[%s2937_s19 + $0x9] sm:$0xff]  ;;  %v2257_v0 = vld [vmem:[%s4082_s1 + $0x200] sm:$0xff]  ;;  %v2256_v5 = vld [vmem:[%s4082_s1 + $0x1f8] sm:$0xff] }
  0x2c   : > { %592 = vmatpush.msra.mxu2 %v444_v42  ;;  %621 = vmatpush.msra.mxu3 %v445_v43  ;;  %v2258_v1 = vld [vmem:[%s4082_s1 + $0x208] sm:$0xff]  ;;  %v2289_v2 = vld [vmem:[%s4082_s1 + $0x2c0] sm:$0xff]  ;;  %v2255_v4 = vld [vmem:[%s4082_s1 + $0x1f0] sm:$0xff] }
  0x2d   : > { %523 = vmatpush.msra.mxu0 %v2201_v44  ;;  %552 = vmatpush.msra.mxu1 %v2202_v45  ;;  %v2290_v3 = vld [vmem:[%s4082_s1 + $0x2c8] sm:$0xff]  ;;  %v2287_v6 = vld [vmem:[%s4082_s1 + $0x2b0] sm:$0xff]  ;;  %v2288_v7 = vld [vmem:[%s4082_s1 + $0x2b8] sm:$0xff] }
  0x2e   : > { %593 = vmatpush.msra.mxu2 %v442_v46  ;;  %622 = vmatpush.msra.mxu3 %v443_v47  ;;  %v2253_v8 = vld [vmem:[%s4082_s1 + $0x1e0] sm:$0xff]  ;;  %v2254_v9 = vld [vmem:[%s4082_s1 + $0x1e8] sm:$0xff]  ;;  %v468_v12 = vld [vmem:[%s2937_s19 + $0x11] sm:$0xff] }
  0x2f   : > { %2225 = vmatmul.msk.f32.vlgmr.msra.gmra.mxu0 %vm495_vm0, %v466_v48  ;;  %2229 = vmatmul.msk.f32.vlgmr.msra.gmra.mxu1 %vm495_vm0, %v466_v48  ;;  %v2285_v10 = vld [vmem:[%s4082_s1 + $0x2a0] sm:$0xff]  ;;  %v2286_v11 = vld [vmem:[%s4082_s1 + $0x2a8] sm:$0xff]  ;;  %v440_v13 = vld [vmem:[%s2937_s19 + $0x10] sm:$0xff] }
  0x30   : > { %2233 = vmatmul.msk.f32.vlgmr.msra.gmra.mxu2 %vm495_vm0, %v438_v49  ;;  %2237 = vmatmul.msk.f32.vlgmr.msra.gmra.mxu3 %vm495_vm0, %v438_v49  ;;  %v2251_v14 = vld [vmem:[%s4082_s1 + $0x1d0] sm:$0xff]  ;;  %v2252_v15 = vld [vmem:[%s4082_s1 + $0x1d8] sm:$0xff]  ;;  %v2249_v18 = vld [vmem:[%s4082_s1 + $0x1c0] sm:$0xff] }
  0x31   : > { %681 = vmatpush.msrb.mxu0 %v2263_v50  ;;  %710 = vmatpush.msrb.mxu1 %v2264_v51  ;;  %v2283_v16 = vld [vmem:[%s4082_s1 + $0x290] sm:$0xff]  ;;  %v2284_v17 = vld [vmem:[%s4082_s1 + $0x298] sm:$0xff]  ;;  %v2250_v19 = vld [vmem:[%s4082_s1 + $0x1c8] sm:$0xff] }
  0x32   : > { %788 = vmatpush.msrb.mxu2 %v2295_v52  ;;  %817 = vmatpush.msrb.mxu3 %v2296_v53  ;;  %v2281_v20 = vld [vmem:[%s4082_s1 + $0x280] sm:$0xff]  ;;  %v2282_v21 = vld [vmem:[%s4082_s1 + $0x288] sm:$0xff]  ;;  %v2247_v22 = vld [vmem:[%s4082_s1 + $0x1b0] sm:$0xff] }
  0x33   : > { %682 = vmatpush.msrb.mxu0 %v2261_v54  ;;  %711 = vmatpush.msrb.mxu1 %v2262_v55  ;;  %v2248_v23 = vld [vmem:[%s4082_s1 + $0x1b8] sm:$0xff]  ;;  %v2279_v24 = vld [vmem:[%s4082_s1 + $0x270] sm:$0xff]  ;;  %v2245_v28 = vld [vmem:[%s4082_s1 + $0x1a0] sm:$0xff] }
  0x34   : > { %789 = vmatpush.msrb.mxu2 %v2293_v56  ;;  %818 = vmatpush.msrb.mxu3 %v2294_v57  ;;  %v2280_v25 = vld [vmem:[%s4082_s1 + $0x278] sm:$0xff]  ;;  %v2246_v29 = vld [vmem:[%s4082_s1 + $0x1a8] sm:$0xff]  ;;  %v2277_v30 = vld [vmem:[%s4082_s1 + $0x260] sm:$0xff] }
  0x35   : > { %683 = vmatpush.msrb.mxu0 %v2259_v58  ;;  %712 = vmatpush.msrb.mxu1 %v2260_v59  ;;  %v469_v26 = vld [vmem:[%s2937_s19 + $0x19] sm:$0xf]  ;;  %v2278_v31 = vld [vmem:[%s4082_s1 + $0x268] sm:$0xff]  ;;  %v2243_v32 = vld [vmem:[%s4082_s1 + $0x190] sm:$0xff] }
  0x36   : > { %790 = vmatpush.msrb.mxu2 %v2291_v60  ;;  %819 = vmatpush.msrb.mxu3 %v2292_v61  ;;  %v441_v27 = vld [vmem:[%s2937_s19 + $0x18] sm:$0xf]  ;;  %v2275_v34 = vld [vmem:[%s4082_s1 + $0x250] sm:$0xff]  ;;  %v2241_v36 = vld [vmem:[%s4082_s1 + $0x180] sm:$0xff] }
  0x37   : > { %2226 = vmatmul.msk.f32.gmra.mxu0 %vm495_vm0, %v467_v62  ;;  %2230 = vmatmul.msk.f32.gmra.mxu1 %vm495_vm0, %v467_v62  ;;  %v2244_v33 = vld [vmem:[%s4082_s1 + $0x198] sm:$0xff]  ;;  %v2242_v37 = vld [vmem:[%s4082_s1 + $0x188] sm:$0xff]  ;;  %v2273_v38 = vld [vmem:[%s4082_s1 + $0x240] sm:$0xff] }
  0x38   : > { %2234 = vmatmul.msk.f32.gmra.mxu2 %vm495_vm0, %v439_v63  ;;  %2238 = vmatmul.msk.f32.gmra.mxu3 %vm495_vm0, %v439_v63  ;;  %v2276_v35 = vld [vmem:[%s4082_s1 + $0x258] sm:$0xff]  ;;  %v2274_v39 = vld [vmem:[%s4082_s1 + $0x248] sm:$0xff]  ;;  %v2327_v42 = vld [vmem:[%s4082_s1 + $0x3b0] sm:$0xff] }
  0x39   : > { %684 = vmatpush.msrb.mxu0 %v2257_v0  ;;  %713 = vmatpush.msrb.mxu1 %v2258_v1  ;;  %v636_v40 = vld [vmem:[%s2937_s19 + $0x2] sm:$0xff]  ;;  %v2328_v43 = vld [vmem:[%s4082_s1 + $0x3b8] sm:$0xff]  ;;  %v2323_v46 = vld [vmem:[%s4082_s1 + $0x390] sm:$0xff] }
  0x3a   : > { %791 = vmatpush.msrb.mxu2 %v2289_v2  ;;  %820 = vmatpush.msrb.mxu3 %v2290_v3  ;;  %v743_v41 = vld [vmem:[%s2937_s19 + $0x3] sm:$0xff]  ;;  %v2324_v47 = vld [vmem:[%s4082_s1 + $0x398] sm:$0xff]  ;;  %v744_v49 = vld [vmem:[%s2937_s19 + $0xb] sm:$0xff] }
  0x3b   : > { %685 = vmatpush.msrb.mxu0 %v2255_v4  ;;  %714 = vmatpush.msrb.mxu1 %v2256_v5  ;;  %v2325_v44 = vld [vmem:[%s4082_s1 + $0x3a0] sm:$0xff]  ;;  %v2326_v45 = vld [vmem:[%s4082_s1 + $0x3a8] sm:$0xff]  ;;  %v2319_v52 = vld [vmem:[%s4082_s1 + $0x370] sm:$0xff] }
  0x3c   : > { %792 = vmatpush.msrb.mxu2 %v2287_v6  ;;  %821 = vmatpush.msrb.mxu3 %v2288_v7  ;;  %v637_v48 = vld [vmem:[%s2937_s19 + $0xa] sm:$0xff]  ;;  %v2321_v50 = vld [vmem:[%s4082_s1 + $0x380] sm:$0xff]  ;;  %v2320_v53 = vld [vmem:[%s4082_s1 + $0x378] sm:$0xff] }
  0x3d   : > { %686 = vmatpush.msrb.mxu0 %v2253_v8  ;;  %715 = vmatpush.msrb.mxu1 %v2254_v9  ;;  %v2322_v51 = vld [vmem:[%s4082_s1 + $0x388] sm:$0xff]  ;;  %v2317_v54 = vld [vmem:[%s4082_s1 + $0x360] sm:$0xff]  ;;  %v638_v56 = vld [vmem:[%s2937_s19 + $0x12] sm:$0xff] }
  0x3e   : > { %793 = vmatpush.msrb.mxu2 %v2285_v10  ;;  %822 = vmatpush.msrb.mxu3 %v2286_v11  ;;  %v2318_v55 = vld [vmem:[%s4082_s1 + $0x368] sm:$0xff]  ;;  %v745_v57 = vld [vmem:[%s2937_s19 + $0x13] sm:$0xff]  ;;  %v2313_v60 = vld [vmem:[%s4082_s1 + $0x340] sm:$0xff] }
  0x3f   : > { %2227 = vmatmul.msk.f32.gmra.mxu0 %vm495_vm0, %v468_v12  ;;  %2231 = vmatmul.msk.f32.gmra.mxu1 %vm495_vm0, %v468_v12  ;;  %v2315_v58 = vld [vmem:[%s4082_s1 + $0x350] sm:$0xff]  ;;  %v2316_v59 = vld [vmem:[%s4082_s1 + $0x358] sm:$0xff]  ;;  %v2314_v61 = vld [vmem:[%s4082_s1 + $0x348] sm:$0xff] }
  0x40   : > { %2235 = vmatmul.msk.f32.gmra.mxu2 %vm495_vm0, %v440_v13  ;;  %2239 = vmatmul.msk.f32.gmra.mxu3 %vm495_vm0, %v440_v13  ;;  %v2311_v62 = vld [vmem:[%s4082_s1 + $0x330] sm:$0xff]  ;;  %v2312_v63 = vld [vmem:[%s4082_s1 + $0x338] sm:$0xff]  ;;  %v2309_v2 = vld [vmem:[%s4082_s1 + $0x320] sm:$0xff] }
  0x41   : > { %687 = vmatpush.msrb.mxu0 %v2251_v14  ;;  %716 = vmatpush.msrb.mxu1 %v2252_v15  ;;  %v639_v0 = vld [vmem:[%s2937_s19 + $0x1a] sm:$0xf]  ;;  %v2310_v3 = vld [vmem:[%s4082_s1 + $0x328] sm:$0xff]  ;;  %v2307_v4 = vld [vmem:[%s4082_s1 + $0x310] sm:$0xff] }
  0x42   : > { %794 = vmatpush.msrb.mxu2 %v2283_v16  ;;  %823 = vmatpush.msrb.mxu3 %v2284_v17  ;;  %v746_v1 = vld [vmem:[%s2937_s19 + $0x1b] sm:$0xf]  ;;  %v2305_v6 = vld [vmem:[%s4082_s1 + $0x300] sm:$0xff]  ;;  %v2306_v7 = vld [vmem:[%s4082_s1 + $0x308] sm:$0xff] }
  0x43   : > { %688 = vmatpush.msrb.mxu0 %v2249_v18  ;;  %717 = vmatpush.msrb.mxu1 %v2250_v19  ;;  %v2308_v5 = vld [vmem:[%s4082_s1 + $0x318] sm:$0xff]  ;;  %v850_v8 = vld [vmem:[%s2937_s19 + $0x4] sm:$0xff]  ;;  %v851_v9 = vld [vmem:[%s2937_s19 + $0xc] sm:$0xff] }
  0x44   : > { %795 = vmatpush.msrb.mxu2 %v2281_v20  ;;  %824 = vmatpush.msrb.mxu3 %v2282_v21  ;;  %v852_v10 = vld [vmem:[%s2937_s19 + $0x14] sm:$0xff]  ;;  %v853_v11 = vld [vmem:[%s2937_s19 + $0x1c] sm:$0xf]  ;;  %s432_s19 = scalar_lea.vmem [#allocation4], %s431_s30 }
  0x45   : > { %689 = vmatpush.msrb.mxu0 %v2247_v22  ;;  %718 = vmatpush.msrb.mxu1 %v2248_v23  ;;  %s2138_s17 = sshll.u32 %s432_s19, 4  ;;  %s2139_s17 = int_to_ptr.vmem [resolvable:$true] %s2138_s17 }
  0x46   : > { %796 = vmatpush.msrb.mxu2 %v2279_v24  ;;  %825 = vmatpush.msrb.mxu3 %v2280_v25 }
  0x47   : > { %2228 = vmatmul.msk.f32.gmra.mxu0 %vm495_vm0, %v469_v26  ;;  %2232 = vmatmul.msk.f32.gmra.mxu1 %vm495_vm0, %v469_v26 }
  0x48   : > { %2236 = vmatmul.msk.f32.gmra.mxu2 %vm495_vm0, %v441_v27  ;;  %2240 = vmatmul.msk.f32.gmra.mxu3 %vm495_vm0, %v441_v27 }
  0x49   : > { %690 = vmatpush.msrb.mxu0 %v2245_v28  ;;  %719 = vmatpush.msrb.mxu1 %v2246_v29 }
  0x4a   : > { %797 = vmatpush.msrb.mxu2 %v2277_v30  ;;  %826 = vmatpush.msrb.mxu3 %v2278_v31 }
  0x4b   : > { %691 = vmatpush.msrb.mxu0 %v2243_v32  ;;  %720 = vmatpush.msrb.mxu1 %v2244_v33 }
  0x4c   : > { %798 = vmatpush.msrb.mxu2 %v2275_v34  ;;  %827 = vmatpush.msrb.mxu3 %v2276_v35 }
  0x4d   : > { %692 = vmatpush.msrb.mxu0 %v2241_v36  ;;  %721 = vmatpush.msrb.mxu1 %v2242_v37 }
  0x4e   : > { %799 = vmatpush.msrb.mxu2 %v2273_v38  ;;  %828 = vmatpush.msrb.mxu3 %v2274_v39 }
  0x4f   : > { %2265 = vmatmul.msk.f32.vlgmr.msrb.gmra.mxu0 %vm495_vm0, %v636_v40  ;;  %2269 = vmatmul.msk.f32.vlgmr.msrb.gmra.mxu1 %vm495_vm0, %v636_v40 }
  0x50   : > { %2297 = vmatmul.msk.f32.vlgmr.msrb.gmra.mxu2 %vm495_vm0, %v743_v41  ;;  %2301 = vmatmul.msk.f32.vlgmr.msrb.gmra.mxu3 %vm495_vm0, %v743_v41 }
  0x51   : > { %895 = vmatpush.msra.mxu0 %v2327_v42  ;;  %924 = vmatpush.msra.mxu1 %v2328_v43 }
  0x53   : > { %896 = vmatpush.msra.mxu0 %v2325_v44  ;;  %925 = vmatpush.msra.mxu1 %v2326_v45 }
  0x55   : > { %897 = vmatpush.msra.mxu0 %v2323_v46  ;;  %926 = vmatpush.msra.mxu1 %v2324_v47 }
  0x57   : > { %2266 = vmatmul.msk.f32.gmra.mxu0 %vm495_vm0, %v637_v48  ;;  %2270 = vmatmul.msk.f32.gmra.mxu1 %vm495_vm0, %v637_v48 }
  0x58   : > { %2298 = vmatmul.msk.f32.gmra.mxu2 %vm495_vm0, %v744_v49  ;;  %2302 = vmatmul.msk.f32.gmra.mxu3 %vm495_vm0, %v744_v49 }
  0x59   : > { %898 = vmatpush.msra.mxu0 %v2321_v50  ;;  %927 = vmatpush.msra.mxu1 %v2322_v51 }
  0x5b   : > { %899 = vmatpush.msra.mxu0 %v2319_v52  ;;  %928 = vmatpush.msra.mxu1 %v2320_v53 }
  0x5d   : > { %900 = vmatpush.msra.mxu0 %v2317_v54  ;;  %929 = vmatpush.msra.mxu1 %v2318_v55 }
  0x5f   : > { %2267 = vmatmul.msk.f32.gmra.mxu0 %vm495_vm0, %v638_v56  ;;  %2271 = vmatmul.msk.f32.gmra.mxu1 %vm495_vm0, %v638_v56 }
  0x60   : > { %2299 = vmatmul.msk.f32.gmra.mxu2 %vm495_vm0, %v745_v57  ;;  %2303 = vmatmul.msk.f32.gmra.mxu3 %vm495_vm0, %v745_v57 }
  0x61   : > { %901 = vmatpush.msra.mxu0 %v2315_v58  ;;  %930 = vmatpush.msra.mxu1 %v2316_v59 }
  0x63   : > { %902 = vmatpush.msra.mxu0 %v2313_v60  ;;  %931 = vmatpush.msra.mxu1 %v2314_v61 }
  0x65   : > { %903 = vmatpush.msra.mxu0 %v2311_v62  ;;  %932 = vmatpush.msra.mxu1 %v2312_v63 }
  0x67   : > { %2268 = vmatmul.msk.f32.gmra.mxu0 %vm495_vm0, %v639_v0  ;;  %2272 = vmatmul.msk.f32.gmra.mxu1 %vm495_vm0, %v639_v0 }
  0x68   : > { %2300 = vmatmul.msk.f32.gmra.mxu2 %vm495_vm0, %v746_v1  ;;  %2304 = vmatmul.msk.f32.gmra.mxu3 %vm495_vm0, %v746_v1 }
  0x69   : > { %904 = vmatpush.msra.mxu0 %v2309_v2  ;;  %933 = vmatpush.msra.mxu1 %v2310_v3  ;;  %v957_v2 = vld [vmem:[%s4083_s2] sm:$0x3] }
  0x6b   : > { %905 = vmatpush.msra.mxu0 %v2307_v4  ;;  %934 = vmatpush.msra.mxu1 %v2308_v5 }
  0x6d   : > { %906 = vmatpush.msra.mxu0 %v2305_v6  ;;  %935 = vmatpush.msra.mxu1 %v2306_v7 }
  0x6f   : > { %2329 = vmatmul.msk.f32.vlgmr.msra.gmra.mxu0 %vm495_vm0, %v850_v8  ;;  %2333 = vmatmul.msk.f32.vlgmr.msra.gmra.mxu1 %vm495_vm0, %v850_v8 }
  0x77   : > { %2330 = vmatmul.msk.f32.gmra.mxu0 %vm495_vm0, %v851_v9  ;;  %2334 = vmatmul.msk.f32.gmra.mxu1 %vm495_vm0, %v851_v9 }
  0x7f   : > { %2331 = vmatmul.msk.f32.gmra.mxu0 %vm495_vm0, %v852_v10  ;;  %2335 = vmatmul.msk.f32.gmra.mxu1 %vm495_vm0, %v852_v10 }
  0x87   : > { %2332 = vmatmul.msk.f32.gmra.mxu0 %vm495_vm0, %v853_v11  ;;  %2336 = vmatmul.msk.f32.gmra.mxu1 %vm495_vm0, %v853_v11 }
  0xac   : > { %v525_v12 = vpop.f32.mrf.mxu0  ;;  %v554_v13 = vpop.f32.mrf.mxu1 }
  0xb3   : > { %v595_v16 = vpop.f32.mrf.mxu2  ;;  %v624_v17 = vpop.f32.mrf.mxu3 }
  0xb4   : > { %v528_v14 = vpop.f32.mrf.mxu0  ;;  %v557_v15 = vpop.f32.mrf.mxu1  ;;  %v596_v56 = vadd.f32 %v595_v16, %v525_v12  ;;  %v625_v57 = vadd.f32 %v624_v17, %v554_v13  ;;  %v959_v13 = vperm.slane %v957_v2, 0 }
  0xbb   : > { %v598_v20 = vpop.f32.mrf.mxu2  ;;  %v627_v21 = vpop.f32.mrf.mxu3 }
  0xbc   : > { %v531_v18 = vpop.f32.mrf.mxu0  ;;  %v560_v19 = vpop.f32.mrf.mxu1  ;;  %v599_v50 = vadd.f32 %v598_v20, %v528_v14  ;;  %v628_v51 = vadd.f32 %v627_v21, %v557_v15  ;;  %v960_v14 = vperm.slane %v957_v2, 1  ;;  %v1120_v2 = vld [vmem:[%s4085_s4 + $0xa0] sm:$0xff] }
  0xbd   : > { %1162 = vmatpush.msrb.mxu1 %v1120_v2  ;;  %v2383_v2 = vld [vmem:[%s4086_s5 + $0xe8] sm:$0xff] }
  0xc3   : > { %v601_v26 = vpop.f32.mrf.mxu2  ;;  %v630_v27 = vpop.f32.mrf.mxu3 }
  0xc4   : > { %v534_v22 = vpop.f32.mrf.mxu0  ;;  %v563_v23 = vpop.f32.mrf.mxu1  ;;  %v602_v48 = vadd.f32 %v601_v26, %v531_v18  ;;  %v631_v49 = vadd.f32 %v630_v27, %v560_v19 }
  0xcb   : > { %v604_v30 = vpop.f32.mrf.mxu2  ;;  %v633_v31 = vpop.f32.mrf.mxu3 }
  0xcc   : > { %v694_v24 = vpop.f32.mrf.mxu0  ;;  %v723_v25 = vpop.f32.mrf.mxu1  ;;  %v605_v52 = vadd.f32 %v604_v30, %v534_v22  ;;  %v634_v53 = vadd.f32 %v633_v31, %v563_v23  ;;  %v1115_v31 = vld [vmem:[%s4085_s4 + $0x78] sm:$0xff] }
  0xcd   : > { %v735_v3 = vadd.f32 %v694_v24, %v596_v56  ;;  %v736_v4 = vadd.f32 %v723_v25, %v625_v57  ;;  %1128 = vmatpush.msrb.mxu0 %v1115_v31  ;;  %v2362_v56 = vld [vmem:[%s4085_s4 + $0xf0] sm:$0xff]  ;;  %v1108_v57 = vld [vmem:[%s4085_s4 + $0x40] sm:$0xff] }
  0xd3   : > { %v801_v34 = vpop.f32.mrf.mxu2  ;;  %v830_v35 = vpop.f32.mrf.mxu3 }
  0xd4   : > { %v697_v28 = vpop.f32.mrf.mxu0  ;;  %v726_v29 = vpop.f32.mrf.mxu1  ;;  %v842_v11 = vadd.f32 %v801_v34, %v735_v3  ;;  %v843_v12 = vadd.f32 %v830_v35, %v736_v4  ;;  %v2357_v3 = vld [vmem:[%s4085_s4 + $0xc8] sm:$0xff] }
  0xd5   : > { %v737_v58 = vadd.f32 %v697_v28, %v599_v50  ;;  %v738_v59 = vadd.f32 %v726_v29, %v628_v51  ;;  %v2365_v50 = vld [vmem:[%s4085_s4 + $0x108] sm:$0xff]  ;;  %v2343_v51 = vld [vmem:[%s4084_s3 + $0x10] sm:$0xff] }
  0xd6   : > { %v2373_v4 = vld [vmem:[%s4085_s4 + $0x148] sm:$0xff] }
  0xdb   : > { %v804_v38 = vpop.f32.mrf.mxu2  ;;  %v833_v39 = vpop.f32.mrf.mxu3 }
  0xdc   : > { %v700_v32 = vpop.f32.mrf.mxu0  ;;  %v729_v33 = vpop.f32.mrf.mxu1  ;;  %v844_v5 = vadd.f32 %v804_v38, %v737_v58  ;;  %v845_v6 = vadd.f32 %v833_v39, %v738_v59  ;;  %v1113_v39 = vld [vmem:[%s4085_s4 + $0x68] sm:$0xff]  ;;  %v1107_v59 = vld [vmem:[%s4085_s4 + $0x38] sm:$0xff] }
  0xdd   : > { %v739_v54 = vadd.f32 %v700_v32, %v602_v48  ;;  %v740_v55 = vadd.f32 %v729_v33, %v631_v49  ;;  %v2367_v48 = vld [vmem:[%s4085_s4 + $0x118] sm:$0xff]  ;;  %v2366_v49 = vld [vmem:[%s4085_s4 + $0x110] sm:$0xff]  ;;  %v2361_v58 = vld [vmem:[%s4085_s4 + $0xe8] sm:$0xff] }
  0xe3   : > { %v807_v44 = vpop.f32.mrf.mxu2  ;;  %v836_v45 = vpop.f32.mrf.mxu3 }
  0xe4   : > { %v703_v36 = vpop.f32.mrf.mxu0  ;;  %v732_v37 = vpop.f32.mrf.mxu1  ;;  %v846_v62 = vadd.f32 %v807_v44, %v739_v54  ;;  %v847_v63 = vadd.f32 %v836_v45, %v740_v55  ;;  %v1111_v44 = vld [vmem:[%s4085_s4 + $0x58] sm:$0xff]  ;;  %v1110_v45 = vld [vmem:[%s4085_s4 + $0x50] sm:$0xff]  ;;  %v1109_v55 = vld [vmem:[%s4085_s4 + $0x48] sm:$0xff] }
  0xe5   : > { %v741_v0 = vadd.f32 %v703_v36, %v605_v52  ;;  %v742_v1 = vadd.f32 %v732_v37, %v634_v53  ;;  %v1114_v36 = vld [vmem:[%s4085_s4 + $0x70] sm:$0xff]  ;;  %v2364_v52 = vld [vmem:[%s4085_s4 + $0x100] sm:$0xff]  ;;  %v2363_v53 = vld [vmem:[%s4085_s4 + $0xf8] sm:$0xff] }
  0xe6   : > { %1129 = vmatpush.msrb.mxu0 %v1114_v36  ;;  %v2344_v54 = vld [vmem:[%s4084_s3 + $0x18] sm:$0x3f] }
  0xe8   : > { %1130 = vmatpush.msrb.mxu0 %v1113_v39 }
  0xeb   : > { %v810_v60 = vpop.f32.mrf.mxu2  ;;  %v839_v61 = vpop.f32.mrf.mxu3 }
  0xec   : > { %v908_v40 = vpop.f32.mrf.mxu0  ;;  %v937_v41 = vpop.f32.mrf.mxu1  ;;  %v848_v7 = vadd.f32 %v810_v60, %v741_v0  ;;  %v849_v8 = vadd.f32 %v839_v61, %v742_v1  ;;  %v2360_v60 = vld [vmem:[%s4085_s4 + $0xe0] sm:$0xff]  ;;  %v1106_v61 = vld [vmem:[%s4085_s4 + $0x30] sm:$0xff] }
  0xed   : > { %v949_v21 = vadd.f32 %v908_v40, %v842_v11  ;;  %v950_v22 = vadd.f32 %v937_v41, %v843_v12  ;;  %v2358_v0 = vld [vmem:[%s4085_s4 + $0xd0] sm:$0xff]  ;;  %v1104_v1 = vld [vmem:[%s4085_s4 + $0x20] sm:$0xff]  ;;  %v2355_v11 = vld [vmem:[%s4085_s4 + $0xb8] sm:$0xff] }
  0xee   : > { %v2371_v12 = vld [vmem:[%s4085_s4 + $0x138] sm:$0xff] }
  0xef   : > { %v963_v32 = vadd.f32 %v959_v13, %v949_v21  ;;  %v964_v33 = vadd.f32 %v960_v14, %v950_v22  ;;  %v1270_v21 = vld [vmem:[%s4086_s5 + $0xa0] sm:$0xf]  ;;  %v1271_v22 = vld [vmem:[%s4086_s5 + $0xa8] sm:$0xf] }
  0xf1   : > { %v971_v40 = vmax.f32 %v963_v32, 0.0  ;;  %v972_v41 = vmax.f32 %v964_v33, 0.0  ;;  %v1264_v33 = vld [vmem:[%s4086_s5 + $0x70] sm:$0xff] }
  0xf4   : > { %v911_v42 = vpop.f32.mrf.mxu0  ;;  %v940_v43 = vpop.f32.mrf.mxu1 }
  0xf5   : > { %v951_v17 = vadd.f32 %v911_v42, %v844_v5  ;;  %v952_v18 = vadd.f32 %v940_v43, %v845_v6  ;;  %v979_v42 = vld [vmem:[%s4084_s3] sm:$0xff]  ;;  %v1103_v5 = vld [vmem:[%s4085_s4 + $0x18] sm:$0xff] }
  0xf6   : > { %v1112_v43 = vld [vmem:[%s4085_s4 + $0x60] sm:$0xff]  ;;  %v1119_v6 = vld [vmem:[%s4085_s4 + $0x98] sm:$0xff] }
  0xf7   : > { %v965_v27 = vadd.f32 %v959_v13, %v951_v17  ;;  %v966_v28 = vadd.f32 %v960_v14, %v952_v18  ;;  %1131 = vmatpush.msrb.mxu0 %v1112_v43  ;;  %1163 = vmatpush.msrb.mxu1 %v1119_v6  ;;  %v1100_v17 = vld [vmem:[%s4085_s4] sm:$0xff]  ;;  %v2381_v6 = vld [vmem:[%s4086_s5 + $0xd8] sm:$0xff] }
  0xf8   : > { %v1116_v18 = vld [vmem:[%s4085_s4 + $0x80] sm:$0xff] }
  0xf9   : > { %v973_v37 = vmax.f32 %v965_v27, 0.0  ;;  %v974_v38 = vmax.f32 %v966_v28, 0.0  ;;  %1132 = vmatpush.msrb.mxu0 %v1111_v44  ;;  %v1266_v27 = vld [vmem:[%s4086_s5 + $0x80] sm:$0xff]  ;;  %v1267_v28 = vld [vmem:[%s4086_s5 + $0x88] sm:$0xff] }
  0xfb   : > { %1133 = vmatpush.msrb.mxu0 %v1110_v45  ;;  %v2392_v45 = vld [vmem:[%s4086_s5 + $0x130] sm:$0xff] }
  0xfc   : > { %v914_v46 = vpop.f32.mrf.mxu0  ;;  %v943_v47 = vpop.f32.mrf.mxu1 }
  0xfd   : > { %v953_v9 = vadd.f32 %v914_v46, %v846_v62  ;;  %v954_v10 = vadd.f32 %v943_v47, %v847_v63  ;;  %v980_v46 = vld [vmem:[%s4084_s3 + $0x8] sm:$0x3f]  ;;  %v2368_v47 = vld [vmem:[%s4085_s4 + $0x120] sm:$0xff]  ;;  %1134 = vmatpush.msrb.mxu0 %v1109_v55  ;;  %v2359_v62 = vld [vmem:[%s4085_s4 + $0xd8] sm:$0xff] }
  0xfe   : > { %v1105_v63 = vld [vmem:[%s4085_s4 + $0x28] sm:$0xff]  ;;  %v1258_v55 = vld [vmem:[%s4086_s5 + $0x40] sm:$0xff] }
  0xff   : > { %v967_v23 = vadd.f32 %v959_v13, %v953_v9  ;;  %v968_v24 = vadd.f32 %v960_v14, %v954_v10  ;;  %1135 = vmatpush.msrb.mxu0 %v1108_v57  ;;  %v1118_v9 = vld [vmem:[%s4085_s4 + $0x90] sm:$0xff]  ;;  %v2386_v57 = vld [vmem:[%s4086_s5 + $0x100] sm:$0xff] }
 0x100   : > { %v1102_v10 = vld [vmem:[%s4085_s4 + $0x10] sm:$0xff]  ;;  %1164 = vmatpush.msrb.mxu1 %v1118_v9  ;;  %v2378_v9 = vld [vmem:[%s4086_s5 + $0xc0] sm:$0xff] }
 0x101   : > { %v975_v34 = vmax.f32 %v967_v23, 0.0  ;;  %v976_v35 = vmax.f32 %v968_v24, 0.0  ;;  %1136 = vmatpush.msrb.mxu0 %v1107_v59  ;;  %v1268_v23 = vld [vmem:[%s4086_s5 + $0x90] sm:$0xff]  ;;  %v1269_v24 = vld [vmem:[%s4086_s5 + $0x98] sm:$0xff] }
 0x102   : > { %v1256_v59 = vld [vmem:[%s4086_s5 + $0x30] sm:$0xff] }
 0x103   : > { %1137 = vmatpush.msrb.mxu0 %v1106_v61  ;;  %v2384_v61 = vld [vmem:[%s4086_s5 + $0xf0] sm:$0xff] }
 0x104   : > { %v917_v15 = vpop.f32.mrf.mxu0  ;;  %v946_v16 = vpop.f32.mrf.mxu1 }
 0x105   : > { %v955_v19 = vadd.f32 %v917_v15, %v848_v7  ;;  %v956_v20 = vadd.f32 %v946_v16, %v849_v8  ;;  %1138 = vmatpush.msrb.mxu0 %v1105_v63  ;;  %v2356_v7 = vld [vmem:[%s4085_s4 + $0xc0] sm:$0xff]  ;;  %v2354_v15 = vld [vmem:[%s4085_s4 + $0xb0] sm:$0xff] }
 0x106   : > { %v2372_v8 = vld [vmem:[%s4085_s4 + $0x140] sm:$0xff]  ;;  %v2370_v16 = vld [vmem:[%s4085_s4 + $0x130] sm:$0xff] }
 0x107   : > { %v969_v25 = vadd.f32 %v959_v13, %v955_v19  ;;  %v970_v26 = vadd.f32 %v960_v14, %v956_v20  ;;  %1139 = vmatpush.msrb.mxu0 %v1104_v1  ;;  %v1101_v13 = vld [vmem:[%s4085_s4 + $0x8] sm:$0xff]  ;;  %v1254_v63 = vld [vmem:[%s4086_s5 + $0x20] sm:$0xff] }
 0x108   : > { %v1117_v14 = vld [vmem:[%s4085_s4 + $0x88] sm:$0xff]  ;;  %v2382_v1 = vld [vmem:[%s4086_s5 + $0xe0] sm:$0xff] }
 0x109   : > { %v977_v29 = vmax.f32 %v969_v25, 0.0  ;;  %v978_v30 = vmax.f32 %v970_v26, 0.0  ;;  %1140 = vmatpush.msrb.mxu0 %v1103_v5  ;;  %1165 = vmatpush.msrb.mxu1 %v1117_v14  ;;  %v2353_v19 = vld [vmem:[%s4085_s4 + $0xa8] sm:$0xff]  ;;  %v2396_v25 = vld [vmem:[%s4086_s5 + $0x150] sm:$0xf]  ;;  %v2377_v14 = vld [vmem:[%s4086_s5 + $0xb8] sm:$0xff] }
 0x10a   : > { %v2369_v20 = vld [vmem:[%s4085_s4 + $0x128] sm:$0xff]  ;;  %v2397_v26 = vld [vmem:[%s4086_s5 + $0x158] sm:$0xf]  ;;  %v2380_v5 = vld [vmem:[%s4086_s5 + $0xd0] sm:$0xff] }
 0x10b   : > { %2337 = vmatpush.msk.msra.mxu2 %vm988_vm1, %v977_v29  ;;  %2340 = vmatpush.msk.msra.mxu3 %vm988_vm1, %v978_v30 }
 0x10c   : > { %1141 = vmatpush.msrb.mxu0 %v1102_v10  ;;  %1166 = vmatpush.msrb.mxu1 %v1116_v18  ;;  %v2379_v10 = vld [vmem:[%s4086_s5 + $0xc8] sm:$0xff] }
 0x10d   : > { %1008 = vmatpush.msra.mxu2 %v975_v34  ;;  %1031 = vmatpush.msra.mxu3 %v976_v35  ;;  %v2431_v18 = vld [vmem:[%s4086_s5 + $0x208] sm:$0xf] }
 0x10e   : > { %1142 = vmatpush.msrb.mxu0 %v1101_v13  ;;  %2401 = vmatpush.msk.msra.mxu1 %vm988_vm1, %v2397_v26  ;;  %v2376_v13 = vld [vmem:[%s4086_s5 + $0xb0] sm:$0xff]  ;;  %v2427_v26 = vld [vmem:[%s4086_s5 + $0x1e8] sm:$0xff] }
 0x10f   : > { %1009 = vmatpush.msra.mxu2 %v973_v37  ;;  %1032 = vmatpush.msra.mxu3 %v974_v38 }
 0x110   : > { %1143 = vmatpush.msrb.mxu0 %v1100_v17  ;;  %v2430_v17 = vld [vmem:[%s4086_s5 + $0x200] sm:$0xf] }
 0x111   : > { %1010 = vmatpush.msra.mxu2 %v971_v40  ;;  %1033 = vmatpush.msra.mxu3 %v972_v41 }
 0x112   : > { %2338 = vmatmul.msk.f32.vlgmr.msra.gmra.mxu2 %vm981_vm2, %v979_v42  ;;  %2341 = vmatmul.msk.f32.vlgmr.msra.gmra.mxu3 %vm981_vm2, %v979_v42 }
 0x113   : > { %2345 = vmatpush.msk.msrb.mxu2 %vm988_vm1, %v977_v29  ;;  %2348 = vmatpush.msk.msrb.mxu3 %vm988_vm1, %v978_v30  ;;  %v2394_v29 = vld [vmem:[%s4086_s5 + $0x140] sm:$0xff]  ;;  %v2395_v30 = vld [vmem:[%s4086_s5 + $0x148] sm:$0xff] }
 0x114   : > { %2398 = vmatpush.msk.msra.mxu0 %vm988_vm1, %v2396_v25  ;;  %1338 = vmatpush.msra.mxu1 %v2395_v30  ;;  %v2426_v25 = vld [vmem:[%s4086_s5 + $0x1e0] sm:$0xff]  ;;  %v2425_v30 = vld [vmem:[%s4086_s5 + $0x1d8] sm:$0xff] }
 0x115   : > { %1063 = vmatpush.msrb.mxu2 %v975_v34  ;;  %1086 = vmatpush.msrb.mxu3 %v976_v35  ;;  %v1265_v34 = vld [vmem:[%s4086_s5 + $0x78] sm:$0xff] }
 0x116   : > { %1315 = vmatpush.msra.mxu0 %v2394_v29  ;;  %v2424_v29 = vld [vmem:[%s4086_s5 + $0x1d0] sm:$0xff] }
 0x117   : > { %1064 = vmatpush.msrb.mxu2 %v973_v37  ;;  %1087 = vmatpush.msrb.mxu3 %v974_v38 }
 0x118   : > { %1316 = vmatpush.msra.mxu0 %v2392_v45  ;;  %v2416_v45 = vld [vmem:[%s4086_s5 + $0x190] sm:$0xff] }
 0x119   : > { %1065 = vmatpush.msrb.mxu2 %v971_v40  ;;  %1088 = vmatpush.msrb.mxu3 %v972_v41 }
 0x11a   : > { %2339 = vmatmul.msk.f32.gmra.mxu2 %vm981_vm2, %v980_v46  ;;  %2342 = vmatmul.msk.f32.gmra.mxu3 %vm981_vm2, %v980_v46  ;;  %v2393_v46 = vld [vmem:[%s4086_s5 + $0x138] sm:$0xff] }
 0x11b   : > { %1196 = vmatpush.msra.mxu2 %v2368_v47  ;;  %1230 = vmatpush.msra.mxu3 %v2373_v4  ;;  %v1262_v47 = vld [vmem:[%s4086_s5 + $0x60] sm:$0xff]  ;;  %v1253_v4 = vld [vmem:[%s4086_s5 + $0x18] sm:$0xff] }
 0x11c   : > { %1339 = vmatpush.msra.mxu1 %v2393_v46  ;;  %v2417_v46 = vld [vmem:[%s4086_s5 + $0x198] sm:$0xff] }
 0x11d   : > { %1197 = vmatpush.msra.mxu2 %v2367_v48  ;;  %1231 = vmatpush.msra.mxu3 %v2372_v8  ;;  %v1263_v48 = vld [vmem:[%s4086_s5 + $0x68] sm:$0xff] }
 0x11e   : > { %v1251_v8 = vld [vmem:[%s4086_s5 + $0x8] sm:$0xff] }
 0x11f   : > { %1198 = vmatpush.msra.mxu2 %v2366_v49  ;;  %1232 = vmatpush.msra.mxu3 %v2371_v12  ;;  %v2390_v49 = vld [vmem:[%s4086_s5 + $0x120] sm:$0xff]  ;;  %v2459_v12 = vld [vmem:[%s4086_s5 + $0x2b8] sm:$0xf] }
 0x120   : > { %1317 = vmatpush.msra.mxu0 %v2390_v49  ;;  %v2414_v49 = vld [vmem:[%s4086_s5 + $0x180] sm:$0xff] }
 0x121   : > { %1199 = vmatpush.msra.mxu2 %v2365_v50  ;;  %1233 = vmatpush.msra.mxu3 %v2370_v16  ;;  %v2391_v50 = vld [vmem:[%s4086_s5 + $0x128] sm:$0xff] }
 0x122   : > { %2346 = vmatmul.msk.f32.vlgmr.msrb.gmra.mxu2 %vm981_vm2, %v2343_v51  ;;  %2349 = vmatmul.msk.f32.vlgmr.msrb.gmra.mxu3 %vm981_vm2, %v2343_v51  ;;  %v1260_v51 = vld [vmem:[%s4086_s5 + $0x50] sm:$0xff]  ;;  %v2457_v16 = vld [vmem:[%s4086_s5 + $0x2a8] sm:$0xff] }
 0x123   : > { %1200 = vmatpush.msra.mxu2 %v2364_v52  ;;  %1234 = vmatpush.msra.mxu3 %v2369_v20  ;;  %v1261_v52 = vld [vmem:[%s4086_s5 + $0x58] sm:$0xff] }
 0x124   : > { %1340 = vmatpush.msra.mxu1 %v2391_v50  ;;  %v2455_v20 = vld [vmem:[%s4086_s5 + $0x298] sm:$0xff]  ;;  %v2415_v50 = vld [vmem:[%s4086_s5 + $0x188] sm:$0xff] }
 0x125   : > { %1201 = vmatpush.msra.mxu2 %v2363_v53  ;;  %2404 = vmatpush.msk.msrb.mxu3 %vm988_vm1, %v1270_v21  ;;  %v2388_v53 = vld [vmem:[%s4086_s5 + $0x110] sm:$0xff] }
 0x126   : > { %1318 = vmatpush.msra.mxu0 %v2388_v53  ;;  %v2428_v21 = vld [vmem:[%s4086_s5 + $0x1f0] sm:$0xff] }
 0x127   : > { %1202 = vmatpush.msra.mxu2 %v2362_v56  ;;  %1373 = vmatpush.msrb.mxu3 %v1268_v23  ;;  %v1259_v56 = vld [vmem:[%s4086_s5 + $0x48] sm:$0xff]  ;;  %v2452_v23 = vld [vmem:[%s4086_s5 + $0x280] sm:$0xff] }
 0x128   : > { %1319 = vmatpush.msra.mxu0 %v2386_v57  ;;  %v2410_v57 = vld [vmem:[%s4086_s5 + $0x160] sm:$0xff] }
 0x129   : > { %1203 = vmatpush.msra.mxu2 %v2361_v58  ;;  %1374 = vmatpush.msrb.mxu3 %v1266_v27  ;;  %v2387_v58 = vld [vmem:[%s4086_s5 + $0x108] sm:$0xff]  ;;  %v2450_v27 = vld [vmem:[%s4086_s5 + $0x270] sm:$0xff] }
 0x12a   : > { %2347 = vmatmul.msk.f32.gmra.mxu2 %vm981_vm2, %v2344_v54  ;;  %2350 = vmatmul.msk.f32.gmra.mxu3 %vm981_vm2, %v2344_v54  ;;  %v2389_v54 = vld [vmem:[%s4086_s5 + $0x118] sm:$0xff] }
 0x12b   : > { %1204 = vmatpush.msra.mxu2 %v2360_v60  ;;  %1375 = vmatpush.msrb.mxu3 %v1264_v33  ;;  %v1257_v60 = vld [vmem:[%s4086_s5 + $0x38] sm:$0xff]  ;;  %v2422_v33 = vld [vmem:[%s4086_s5 + $0x1c0] sm:$0xff] }
 0x12c   : > { %1341 = vmatpush.msra.mxu1 %v2389_v54  ;;  %1320 = vmatpush.msra.mxu0 %v2384_v61 }
 0x12d   : > { %1205 = vmatpush.msra.mxu2 %v2359_v62  ;;  %1376 = vmatpush.msrb.mxu3 %v1262_v47  ;;  %v2385_v62 = vld [vmem:[%s4086_s5 + $0xf8] sm:$0xff]  ;;  %v2440_v47 = vld [vmem:[%s4086_s5 + $0x220] sm:$0xff] }
 0x12e   : > { %1342 = vmatpush.msra.mxu1 %v2387_v58  ;;  %1321 = vmatpush.msra.mxu0 %v2382_v1  ;;  %v2411_v58 = vld [vmem:[%s4086_s5 + $0x168] sm:$0xff] }
 0x12f   : > { %1206 = vmatpush.msra.mxu2 %v2358_v0  ;;  %1377 = vmatpush.msrb.mxu3 %v1260_v51  ;;  %v1255_v0 = vld [vmem:[%s4086_s5 + $0x28] sm:$0xff]  ;;  %v2438_v51 = vld [vmem:[%s4086_s5 + $0x210] sm:$0xff] }
 0x130   : > { %1343 = vmatpush.msra.mxu1 %v2385_v62  ;;  %1322 = vmatpush.msra.mxu0 %v2380_v5 }
 0x131   : > { %1207 = vmatpush.msra.mxu2 %v2357_v3  ;;  %1378 = vmatpush.msrb.mxu3 %v1258_v55  ;;  %v1252_v3 = vld [vmem:[%s4086_s5 + $0x10] sm:$0xff] }
 0x132   : > { %1344 = vmatpush.msra.mxu1 %v2383_v2  ;;  %1323 = vmatpush.msra.mxu0 %v2378_v9  ;;  %v2412_v55 = vld [vmem:[%s4086_s5 + $0x170] sm:$0xff] }
 0x133   : > { %1208 = vmatpush.msra.mxu2 %v2356_v7  ;;  %1379 = vmatpush.msrb.mxu3 %v1256_v59  ;;  %v1250_v7 = vld [vmem:[%s4086_s5] sm:$0xff] }
 0x134   : > { %1345 = vmatpush.msra.mxu1 %v2381_v6  ;;  %1324 = vmatpush.msra.mxu0 %v2376_v13  ;;  %v2485_v13 = vld [vmem:[%s4086_s5 + $0x358] sm:$0xff] }
 0x135   : > { %1209 = vmatpush.msra.mxu2 %v2355_v11  ;;  %1380 = vmatpush.msrb.mxu3 %v1254_v63  ;;  %v2458_v11 = vld [vmem:[%s4086_s5 + $0x2b0] sm:$0xf] }
 0x136   : > { %1346 = vmatpush.msra.mxu1 %v2379_v10 }
 0x137   : > { %1210 = vmatpush.msra.mxu2 %v2354_v15  ;;  %1381 = vmatpush.msrb.mxu3 %v1252_v3  ;;  %v2456_v15 = vld [vmem:[%s4086_s5 + $0x2a0] sm:$0xff] }
 0x138   : > { %1347 = vmatpush.msra.mxu1 %v2377_v14  ;;  %v2482_v14 = vld [vmem:[%s4086_s5 + $0x340] sm:$0xff] }
 0x139   : > { %1211 = vmatpush.msra.mxu2 %v2353_v19  ;;  %1382 = vmatpush.msrb.mxu3 %v1250_v7  ;;  %v2454_v19 = vld [vmem:[%s4086_s5 + $0x290] sm:$0xff] }
 0x13b   : > { %2407 = vmatpush.msk.msrb.mxu2 %vm988_vm1, %v1271_v22  ;;  %v2429_v22 = vld [vmem:[%s4086_s5 + $0x1f8] sm:$0xff] }
 0x13d   : > { %1396 = vmatpush.msrb.mxu2 %v1269_v24  ;;  %v2453_v24 = vld [vmem:[%s4086_s5 + $0x288] sm:$0xff] }
 0x13f   : > { %1397 = vmatpush.msrb.mxu2 %v1267_v28  ;;  %v2451_v28 = vld [vmem:[%s4086_s5 + $0x278] sm:$0xff] }
 0x141   : > { %1398 = vmatpush.msrb.mxu2 %v1265_v34  ;;  %v2423_v34 = vld [vmem:[%s4086_s5 + $0x1c8] sm:$0xff] }
 0x143   : > { %1399 = vmatpush.msrb.mxu2 %v1263_v48  ;;  %v2441_v48 = vld [vmem:[%s4086_s5 + $0x228] sm:$0xff] }
 0x145   : > { %1400 = vmatpush.msrb.mxu2 %v1261_v52  ;;  %v2439_v52 = vld [vmem:[%s4086_s5 + $0x218] sm:$0xff] }
 0x147   : > { %1401 = vmatpush.msrb.mxu2 %v1259_v56  ;;  %v2413_v56 = vld [vmem:[%s4086_s5 + $0x178] sm:$0xff] }
 0x149   : > { %1402 = vmatpush.msrb.mxu2 %v1257_v60 }
 0x14b   : > { %1403 = vmatpush.msrb.mxu2 %v1255_v0 }
 0x14d   : > { %1404 = vmatpush.msrb.mxu2 %v1253_v4 }
 0x14f   : > { %1405 = vmatpush.msrb.mxu2 %v1251_v8  ;;  %v2486_v8 = vld [vmem:[%s4086_s5 + $0x360] sm:$0xf] }
 0x195   : > { %v1012_v31 = vpop.f32.mrf.mxu2  ;;  %v1035_v32 = vpop.f32.mrf.mxu3 }
 0x19d   : > { %v1015_v35 = vpop.f32.mrf.mxu2  ;;  %v1038_v36 = vpop.f32.mrf.mxu3 }
 0x1a5   : > { %v1067_v37 = vpop.f32.mrf.mxu2  ;;  %v1090_v38 = vpop.f32.mrf.mxu3 }
 0x1a6   : > { %v1096_v39 = vmax.f32 %v1012_v31, %v1067_v37  ;;  %v1097_v40 = vmax.f32 %v1035_v32, %v1090_v38  ;;  %v2448_v31 = vld [vmem:[%s4086_s5 + $0x260] sm:$0xff]  ;;  %v2449_v32 = vld [vmem:[%s4086_s5 + $0x268] sm:$0xff]  ;;  %v2420_v37 = vld [vmem:[%s4086_s5 + $0x1b0] sm:$0xff] }
 0x1a7   : > { %v2421_v38 = vld [vmem:[%s4086_s5 + $0x1b8] sm:$0xff] }
 0x1a8   : > { %1144 = vmatmul.f32.vlgmr.msrb.gmra.mxu0 %v1096_v39  ;;  %2351 = vmatmul.msk.f32.vlgmr.msrb.gmra.mxu1 %vm1121_vm3, %v1097_v40 }
 0x1a9   : > { %1212 = vmatmul.f32.vlgmr.msra.gmra.mxu2 %v1096_v39  ;;  %2374 = vmatmul.msk.f32.vlgmr.msra.gmra.mxu3 %vm1121_vm3, %v1097_v40  ;;  %v2444_v39 = vld [vmem:[%s4086_s5 + $0x240] sm:$0xff]  ;;  %v2445_v40 = vld [vmem:[%s4086_s5 + $0x248] sm:$0xff] }
 0x1aa   : > { %2460 = vmatpush.msk.msra.mxu3 %vm988_vm1, %v2458_v11  ;;  %2463 = vmatpush.msk.msra.mxu2 %vm988_vm1, %v2459_v12  ;;  %v2487_v11 = vld [vmem:[%s4086_s5 + $0x368] sm:$0xf]  ;;  %v2484_v12 = vld [vmem:[%s4086_s5 + $0x350] sm:$0xff] }
 0x1ab   : > { %2432 = vmatpush.msk.msrb.mxu0 %vm988_vm1, %v2430_v17  ;;  %2435 = vmatpush.msk.msrb.mxu1 %vm988_vm1, %v2431_v18  ;;  %v2480_v17 = vld [vmem:[%s4086_s5 + $0x330] sm:$0xff]  ;;  %v2481_v18 = vld [vmem:[%s4086_s5 + $0x338] sm:$0xff] }
 0x1ac   : > { %1543 = vmatpush.msra.mxu3 %v2456_v15  ;;  %1566 = vmatpush.msra.mxu2 %v2457_v16  ;;  %v2483_v15 = vld [vmem:[%s4086_s5 + $0x348] sm:$0xff] }
 0x1ad   : > { %v1070_v41 = vpop.f32.mrf.mxu2  ;;  %v1093_v42 = vpop.f32.mrf.mxu3  ;;  %1456 = vmatpush.msrb.mxu0 %v2428_v21  ;;  %1479 = vmatpush.msrb.mxu1 %v2429_v22  ;;  %v2479_v21 = vld [vmem:[%s4086_s5 + $0x328] sm:$0xff]  ;;  %v2476_v22 = vld [vmem:[%s4086_s5 + $0x310] sm:$0xff] }
 0x1ae   : > { %v1098_v43 = vmax.f32 %v1015_v35, %v1070_v41  ;;  %v1099_v44 = vmax.f32 %v1038_v36, %v1093_v42  ;;  %1544 = vmatpush.msra.mxu3 %v2454_v19  ;;  %1567 = vmatpush.msra.mxu2 %v2455_v20  ;;  %v2446_v35 = vld [vmem:[%s4086_s5 + $0x250] sm:$0xff]  ;;  %v2447_v36 = vld [vmem:[%s4086_s5 + $0x258] sm:$0xff]  ;;  %v2418_v41 = vld [vmem:[%s4086_s5 + $0x1a0] sm:$0xff] }
 0x1af   : > { %1457 = vmatpush.msrb.mxu0 %v2426_v25  ;;  %1480 = vmatpush.msrb.mxu1 %v2427_v26  ;;  %v2419_v42 = vld [vmem:[%s4086_s5 + $0x1a8] sm:$0xff]  ;;  %v2478_v20 = vld [vmem:[%s4086_s5 + $0x320] sm:$0xff] }
 0x1b0   : > { %1147 = vmatmul.f32.gmra.mxu0 %v1098_v43  ;;  %2352 = vmatmul.msk.f32.gmra.mxu1 %vm1121_vm3, %v1099_v44  ;;  %v2474_v25 = vld [vmem:[%s4086_s5 + $0x300] sm:$0xff]  ;;  %v2475_v26 = vld [vmem:[%s4086_s5 + $0x308] sm:$0xff] }
 0x1b1   : > { %1215 = vmatmul.f32.gmra.mxu2 %v1098_v43  ;;  %2375 = vmatmul.msk.f32.gmra.mxu3 %vm1121_vm3, %v1099_v44  ;;  %v2442_v43 = vld [vmem:[%s4086_s5 + $0x230] sm:$0xff]  ;;  %v2443_v44 = vld [vmem:[%s4086_s5 + $0x238] sm:$0xff] }
 0x1b2   : > { %1545 = vmatpush.msra.mxu3 %v2452_v23  ;;  %1568 = vmatpush.msra.mxu2 %v2453_v24  ;;  %v2477_v23 = vld [vmem:[%s4086_s5 + $0x318] sm:$0xff] }
 0x1b3   : > { %1458 = vmatpush.msrb.mxu0 %v2424_v29  ;;  %1481 = vmatpush.msrb.mxu1 %v2425_v30  ;;  %v2473_v29 = vld [vmem:[%s4086_s5 + $0x2f8] sm:$0xff]  ;;  %v2470_v30 = vld [vmem:[%s4086_s5 + $0x2e0] sm:$0xff] }
 0x1b4   : > { %1546 = vmatpush.msra.mxu3 %v2450_v27  ;;  %1569 = vmatpush.msra.mxu2 %v2451_v28  ;;  %v2472_v28 = vld [vmem:[%s4086_s5 + $0x2f0] sm:$0xff] }
 0x1b5   : > { %1459 = vmatpush.msrb.mxu0 %v2422_v33  ;;  %1482 = vmatpush.msrb.mxu1 %v2423_v34  ;;  %v2469_v33 = vld [vmem:[%s4086_s5 + $0x2d8] sm:$0xff] }
 0x1b6   : > { %1547 = vmatpush.msra.mxu3 %v2448_v31  ;;  %1570 = vmatpush.msra.mxu2 %v2449_v32  ;;  %v2471_v31 = vld [vmem:[%s4086_s5 + $0x2e8] sm:$0xff]  ;;  %v2468_v32 = vld [vmem:[%s4086_s5 + $0x2d0] sm:$0xff] }
 0x1b7   : > { %1460 = vmatpush.msrb.mxu0 %v2420_v37  ;;  %1483 = vmatpush.msrb.mxu1 %v2421_v38 }
 0x1b8   : > { %1548 = vmatpush.msra.mxu3 %v2446_v35  ;;  %1571 = vmatpush.msra.mxu2 %v2447_v36  ;;  %v2466_v35 = vld [vmem:[%s4086_s5 + $0x2c0] sm:$0xff]  ;;  %v2467_v36 = vld [vmem:[%s4086_s5 + $0x2c8] sm:$0xff] }
 0x1b9   : > { %1461 = vmatpush.msrb.mxu0 %v2418_v41  ;;  %1484 = vmatpush.msrb.mxu1 %v2419_v42 }
 0x1ba   : > { %1549 = vmatpush.msra.mxu3 %v2444_v39  ;;  %1572 = vmatpush.msra.mxu2 %v2445_v40 }
 0x1bb   : > { %1462 = vmatpush.msrb.mxu0 %v2416_v45  ;;  %1485 = vmatpush.msrb.mxu1 %v2417_v46 }
 0x1bc   : > { %1550 = vmatpush.msra.mxu3 %v2442_v43  ;;  %1573 = vmatpush.msra.mxu2 %v2443_v44 }
 0x1bd   : > { %1463 = vmatpush.msrb.mxu0 %v2414_v49  ;;  %1486 = vmatpush.msrb.mxu1 %v2415_v50 }
 0x1be   : > { %1551 = vmatpush.msra.mxu3 %v2440_v47  ;;  %1574 = vmatpush.msra.mxu2 %v2441_v48 }
 0x1bf   : > { %1464 = vmatpush.msrb.mxu0 %v2412_v55  ;;  %1487 = vmatpush.msrb.mxu1 %v2413_v56 }
 0x1c0   : > { %1552 = vmatpush.msra.mxu3 %v2438_v51  ;;  %1575 = vmatpush.msra.mxu2 %v2439_v52 }
 0x1c1   : > { %1465 = vmatpush.msrb.mxu0 %v2410_v57  ;;  %1488 = vmatpush.msrb.mxu1 %v2411_v58 }
 0x225   : > { %v1145_v53 = vpop.f32.mrf.mxu0  ;;  %v1168_v54 = vpop.f32.mrf.mxu1 }
 0x226   : > { %v1169_v61 = vadd.f32 %v1168_v54, %v1145_v53 }
 0x22c   : > { %v1213_v59 = vpop.f32.mrf.mxu2  ;;  %v1236_v60 = vpop.f32.mrf.mxu3 }
 0x22d   : > { %v1237_v62 = vadd.f32 %v1236_v60, %v1213_v59  ;;  %v1148_v0 = vpop.f32.mrf.mxu0  ;;  %v1171_v1 = vpop.f32.mrf.mxu1 }
 0x22e   : > { %v1172_v4 = vadd.f32 %v1171_v1, %v1148_v0  ;;  %v1674_v0 = vld [vmem:[%s4087_s6] sm:$0x3] }
 0x22f   : > { %v1242_v63 = vmax.f32 %v1169_v61, %v1237_v62  ;;  %v1802_v62 = vld [vmem:[%s4089_s8 + $0x78] sm:$0xff] }
 0x231   : > { %1245 = vst.msk [vmem:[#allocation2] sm:$0xff] %vm1244_vm4, %v1242_v63  ;;  %v1801_v63 = vld [vmem:[%s4089_s8 + $0x70] sm:$0xff] }
 0x234   : > { %v1216_v2 = vpop.f32.mrf.mxu2  ;;  %v1239_v3 = vpop.f32.mrf.mxu3 }
 0x235   : > { %v1240_v5 = vadd.f32 %v1239_v3, %v1216_v2  ;;  %v1800_v3 = vld [vmem:[%s4089_s8 + $0x68] sm:$0xff] }
 0x237   : > { %v1243_v6 = vmax.f32 %v1172_v4, %v1240_v5 }
 0x238   : > { %v1248_v7 = vld [vmem:[#allocation2] sm:$0xff] }
 0x239   : > { %1247 = vst.msk [vmem:[#allocation2 + $0x8] sm:$0x3f] %vm1246_vm5, %v1243_v6  ;;  %2405 = vmatmul.msk.f32.vlgmr.msrb.gmra.mxu3 %vm1244_vm4, %v1248_v7  ;;  %2408 = vmatmul.msk.f32.vlgmr.msrb.gmra.mxu2 %vm1244_vm4, %v1248_v7  ;;  %v1676_v7 = vperm.slane %v1674_v0, 0 }
 0x240   : > { %v1272_v9 = vld [vmem:[#allocation2 + $0x1] sm:$0xff]  ;;  %v1273_v16 = vld [vmem:[#allocation2 + $0x9] sm:$0x3]  ;;  %v1501_v27 = vld [vmem:[#allocation2 + $0xb] sm:$0x3] }
 0x241   : > { %v1249_v10 = vld [vmem:[#allocation2 + $0x8] sm:$0x3]  ;;  %2399 = vmatmul.msk.f32.vlgmr.msra.gmra.mxu0 %vm1244_vm4, %v1272_v9  ;;  %2402 = vmatmul.msk.f32.vlgmr.msra.gmra.mxu1 %vm1244_vm4, %v1272_v9  ;;  %v1414_v34 = vld [vmem:[#allocation2 + $0xa] sm:$0x3]  ;;  %v1588_v38 = vld [vmem:[#allocation2 + $0xc] sm:$0x3] }
 0x242   : > { %2406 = vmatmul.msk.f32.gmra.mxu3 %vm1244_vm4, %v1249_v10  ;;  %2409 = vmatmul.msk.f32.gmra.mxu2 %vm1244_vm4, %v1249_v10  ;;  %v1500_v19 = vld [vmem:[#allocation2 + $0x3] sm:$0xff] }
 0x243   : > { %2488 = vmatpush.msk.msra.mxu0 %vm988_vm1, %v2486_v8  ;;  %2491 = vmatpush.msk.msra.mxu1 %vm988_vm1, %v2487_v11  ;;  %v1413_v24 = vld [vmem:[#allocation2 + $0x2] sm:$0xff] }
 0x244   : > { %v1587_v37 = vld [vmem:[#allocation2 + $0x4] sm:$0xff] }
 0x245   : > { %1630 = vmatpush.msra.mxu0 %v2484_v12  ;;  %1653 = vmatpush.msra.mxu1 %v2485_v13 }
 0x247   : > { %1631 = vmatpush.msra.mxu0 %v2482_v14  ;;  %1654 = vmatpush.msra.mxu1 %v2483_v15 }
 0x249   : > { %2400 = vmatmul.msk.f32.gmra.mxu0 %vm1244_vm4, %v1273_v16  ;;  %2403 = vmatmul.msk.f32.gmra.mxu1 %vm1244_vm4, %v1273_v16 }
 0x24a   : > { %2461 = vmatmul.msk.f32.vlgmr.msra.gmra.mxu3 %vm1244_vm4, %v1500_v19  ;;  %2464 = vmatmul.msk.f32.vlgmr.msra.gmra.mxu2 %vm1244_vm4, %v1500_v19 }
 0x24b   : > { %1632 = vmatpush.msra.mxu0 %v2480_v17  ;;  %1655 = vmatpush.msra.mxu1 %v2481_v18  ;;  %v1677_v17 = vperm.slane %v1674_v0, 1  ;;  %v1926_v0 = vld [vmem:[%s4090_s9 + $0x48] sm:$0xff] }
 0x24d   : > { %1633 = vmatpush.msra.mxu0 %v2478_v20  ;;  %1656 = vmatpush.msra.mxu1 %v2479_v21 }
 0x24f   : > { %1634 = vmatpush.msra.mxu0 %v2476_v22  ;;  %1657 = vmatpush.msra.mxu1 %v2477_v23  ;;  %v1688_v23 = vld [vmem:[%s4088_s7] sm:$0x1f] }
 0x251   : > { %2433 = vmatmul.msk.f32.vlgmr.msrb.gmra.mxu0 %vm1244_vm4, %v1413_v24  ;;  %2436 = vmatmul.msk.f32.vlgmr.msrb.gmra.mxu1 %vm1244_vm4, %v1413_v24  ;;  %v2498_v24 = vld [vmem:[%s4088_s7 + $0x8] sm:$0x1f] }
 0x252   : > { %2462 = vmatmul.msk.f32.gmra.mxu3 %vm1244_vm4, %v1501_v27  ;;  %2465 = vmatmul.msk.f32.gmra.mxu2 %vm1244_vm4, %v1501_v27  ;;  %v2518_v27 = vld [vmem:[%s4089_s8 + $0x110] sm:$0xff] }
 0x253   : > { %1635 = vmatpush.msra.mxu0 %v2474_v25  ;;  %1658 = vmatpush.msra.mxu1 %v2475_v26  ;;  %v2519_v25 = vld [vmem:[%s4089_s8 + $0x118] sm:$0xff] }
 0x255   : > { %1636 = vmatpush.msra.mxu0 %v2472_v28  ;;  %1659 = vmatpush.msra.mxu1 %v2473_v29  ;;  %v2517_v29 = vld [vmem:[%s4089_s8 + $0x108] sm:$0xff] }
 0x257   : > { %1637 = vmatpush.msra.mxu0 %v2470_v30  ;;  %1660 = vmatpush.msra.mxu1 %v2471_v31  ;;  %v2516_v30 = vld [vmem:[%s4089_s8 + $0x100] sm:$0xff]  ;;  %v2515_v31 = vld [vmem:[%s4089_s8 + $0xf8] sm:$0xff] }
 0x259   : > { %2434 = vmatmul.msk.f32.gmra.mxu0 %vm1244_vm4, %v1414_v34  ;;  %2437 = vmatmul.msk.f32.gmra.mxu1 %vm1244_vm4, %v1414_v34  ;;  %v1798_v34 = vld [vmem:[%s4089_s8 + $0x58] sm:$0xff] }
 0x25a   : > { %1638 = vmatpush.msra.mxu0 %v2468_v32  ;;  %1661 = vmatpush.msra.mxu1 %v2469_v33  ;;  %v2514_v32 = vld [vmem:[%s4089_s8 + $0xf0] sm:$0xff]  ;;  %v1799_v33 = vld [vmem:[%s4089_s8 + $0x60] sm:$0xff] }
 0x25c   : > { %1639 = vmatpush.msra.mxu0 %v2466_v35  ;;  %1662 = vmatpush.msra.mxu1 %v2467_v36  ;;  %v1797_v35 = vld [vmem:[%s4089_s8 + $0x50] sm:$0xff]  ;;  %v2513_v36 = vld [vmem:[%s4089_s8 + $0xe8] sm:$0xff] }
 0x25e   : > { %1811 = vmatpush.msrb.mxu0 %v1802_v62  ;;  %v1804_v62 = vld [vmem:[%s4089_s8 + $0x88] sm:$0xff] }
 0x260   : > { %1812 = vmatpush.msrb.mxu0 %v1801_v63  ;;  %v1803_v63 = vld [vmem:[%s4089_s8 + $0x80] sm:$0xff] }
 0x261   : > { %2489 = vmatmul.msk.f32.vlgmr.msra.gmra.mxu0 %vm1244_vm4, %v1587_v37  ;;  %2492 = vmatmul.msk.f32.vlgmr.msra.gmra.mxu1 %vm1244_vm4, %v1587_v37  ;;  %v1796_v37 = vld [vmem:[%s4089_s8 + $0x48] sm:$0xff] }
 0x262   : > { %1813 = vmatpush.msrb.mxu0 %v1800_v3  ;;  %v2534_v3 = vld [vmem:[%s4090_s9 + $0x90] sm:$0xff] }
 0x264   : > { %1814 = vmatpush.msrb.mxu0 %v1799_v33  ;;  %v2556_v33 = vld [vmem:[%s4090_s9 + $0x130] sm:$0xff] }
 0x266   : > { %1815 = vmatpush.msrb.mxu0 %v1798_v34  ;;  %v2567_v34 = vld [vmem:[%s4090_s9 + $0x180] sm:$0xff] }
 0x268   : > { %1816 = vmatpush.msrb.mxu0 %v1797_v35  ;;  %v2555_v35 = vld [vmem:[%s4090_s9 + $0x128] sm:$0xff] }
 0x269   : > { %2490 = vmatmul.msk.f32.gmra.mxu0 %vm1244_vm4, %v1588_v38  ;;  %2493 = vmatmul.msk.f32.gmra.mxu1 %vm1244_vm4, %v1588_v38  ;;  %v2512_v38 = vld [vmem:[%s4089_s8 + $0xe0] sm:$0xff] }
 0x26a   : > { %1817 = vmatpush.msrb.mxu0 %v1796_v37  ;;  %v2541_v37 = vld [vmem:[%s4090_s9 + $0xc0] sm:$0xff] }
 0x2bc   : > { %v1384_v41 = vpop.f32.mrf.mxu3  ;;  %v1407_v42 = vpop.f32.mrf.mxu2 }
 0x2be   : > { %v1326_v39 = vpop.f32.mrf.mxu0  ;;  %v1349_v40 = vpop.f32.mrf.mxu1 }
 0x2bf   : > { %v1385_v53 = vadd.f32 %v1384_v41, %v1326_v39  ;;  %v1408_v59 = vadd.f32 %v1407_v42, %v1349_v40  ;;  %v1795_v39 = vld [vmem:[%s4089_s8 + $0x40] sm:$0xff]  ;;  %v2511_v40 = vld [vmem:[%s4089_s8 + $0xd8] sm:$0xff]  ;;  %v2510_v42 = vld [vmem:[%s4089_s8 + $0xd0] sm:$0xff] }
 0x2c0   : > { %1818 = vmatpush.msrb.mxu0 %v1795_v39  ;;  %v1794_v41 = vld [vmem:[%s4089_s8 + $0x38] sm:$0xff]  ;;  %v2565_v39 = vld [vmem:[%s4090_s9 + $0x170] sm:$0xff] }
 0x2c2   : > { %1819 = vmatpush.msrb.mxu0 %v1794_v41  ;;  %v2539_v41 = vld [vmem:[%s4090_s9 + $0xb0] sm:$0xff] }
 0x2c5   : > { %v1387_v47 = vpop.f32.mrf.mxu3  ;;  %v1410_v48 = vpop.f32.mrf.mxu2 }
 0x2c6   : > { %v1329_v43 = vpop.f32.mrf.mxu0  ;;  %v1352_v44 = vpop.f32.mrf.mxu1 }
 0x2c7   : > { %v1388_v56 = vadd.f32 %v1387_v47, %v1329_v43  ;;  %v1411_v57 = vadd.f32 %v1410_v48, %v1352_v44  ;;  %v1793_v43 = vld [vmem:[%s4089_s8 + $0x30] sm:$0xff]  ;;  %v2509_v44 = vld [vmem:[%s4089_s8 + $0xc8] sm:$0xff]  ;;  %v1791_v47 = vld [vmem:[%s4089_s8 + $0x20] sm:$0xff] }
 0x2c8   : > { %1820 = vmatpush.msrb.mxu0 %v1793_v43  ;;  %v2507_v48 = vld [vmem:[%s4089_s8 + $0xb8] sm:$0xff]  ;;  %v2564_v43 = vld [vmem:[%s4090_s9 + $0x168] sm:$0xff] }
 0x2cd   : > { %v1554_v51 = vpop.f32.mrf.mxu3  ;;  %v1577_v52 = vpop.f32.mrf.mxu2 }
 0x2ce   : > { %v1467_v45 = vpop.f32.mrf.mxu0  ;;  %v1490_v46 = vpop.f32.mrf.mxu1 }
 0x2cf   : > { %v1496_v58 = vadd.f32 %v1467_v45, %v1385_v53  ;;  %v1497_v1 = vadd.f32 %v1490_v46, %v1408_v59  ;;  %v1792_v45 = vld [vmem:[%s4089_s8 + $0x28] sm:$0xff]  ;;  %v2508_v46 = vld [vmem:[%s4089_s8 + $0xc0] sm:$0xff]  ;;  %v1805_v59 = vld [vmem:[%s4089_s8 + $0x90] sm:$0xff] }
 0x2d0   : > { %1821 = vmatpush.msrb.mxu0 %v1792_v45  ;;  %v1788_v53 = vld [vmem:[%s4089_s8 + $0x8] sm:$0xff]  ;;  %v2563_v45 = vld [vmem:[%s4090_s9 + $0x160] sm:$0xff] }
 0x2d1   : > { %v1583_v2 = vadd.f32 %v1554_v51, %v1496_v58  ;;  %v1584_v12 = vadd.f32 %v1577_v52, %v1497_v1  ;;  %v1789_v51 = vld [vmem:[%s4089_s8 + $0x10] sm:$0xff]  ;;  %v2505_v52 = vld [vmem:[%s4089_s8 + $0xa8] sm:$0xff]  ;;  %v1806_v58 = vld [vmem:[%s4089_s8 + $0x98] sm:$0xff] }
 0x2d2   : > { %1822 = vmatpush.msrb.mxu0 %v1791_v47  ;;  %1843 = vmatpush.msrb.mxu1 %v1806_v58  ;;  %v2535_v1 = vld [vmem:[%s4090_s9 + $0x98] sm:$0xff]  ;;  %v2551_v47 = vld [vmem:[%s4090_s9 + $0x108] sm:$0xff] }
 0x2d4   : > { %1844 = vmatpush.msrb.mxu1 %v1805_v59 }
 0x2d5   : > { %v1557_v4 = vpop.f32.mrf.mxu3  ;;  %v1580_v5 = vpop.f32.mrf.mxu2 }
 0x2d6   : > { %v1470_v49 = vpop.f32.mrf.mxu0  ;;  %v1493_v50 = vpop.f32.mrf.mxu1  ;;  %1845 = vmatpush.msrb.mxu1 %v1804_v62 }
 0x2d7   : > { %v1498_v60 = vadd.f32 %v1470_v49, %v1388_v56  ;;  %v1499_v61 = vadd.f32 %v1493_v50, %v1411_v57  ;;  %v1790_v49 = vld [vmem:[%s4089_s8 + $0x18] sm:$0xff]  ;;  %v2506_v50 = vld [vmem:[%s4089_s8 + $0xb0] sm:$0xff] }
 0x2d8   : > { %1823 = vmatpush.msrb.mxu0 %v1790_v49  ;;  %v2523_v56 = vld [vmem:[%s4089_s8 + $0x138] sm:$0xff]  ;;  %v2522_v57 = vld [vmem:[%s4089_s8 + $0x130] sm:$0xff]  ;;  %1846 = vmatpush.msrb.mxu1 %v1803_v63  ;;  %v2537_v49 = vld [vmem:[%s4090_s9 + $0xa0] sm:$0xff] }
 0x2d9   : > { %v1585_v8 = vadd.f32 %v1557_v4, %v1498_v60  ;;  %v1586_v9 = vadd.f32 %v1580_v5, %v1499_v61  ;;  %v2521_v60 = vld [vmem:[%s4089_s8 + $0x128] sm:$0xff]  ;;  %v2520_v61 = vld [vmem:[%s4089_s8 + $0x120] sm:$0xff]  ;;  %v1924_v4 = vld [vmem:[%s4090_s9 + $0x38] sm:$0xff] }
 0x2da   : > { %1824 = vmatpush.msrb.mxu0 %v1789_v51  ;;  %1937 = vmatpush.msra.mxu1 %v1926_v0  ;;  %v2533_v5 = vld [vmem:[%s4090_s9 + $0x88] sm:$0xff]  ;;  %v2561_v51 = vld [vmem:[%s4090_s9 + $0x150] sm:$0xff] }
 0x2dc   : > { %1825 = vmatpush.msrb.mxu0 %v1788_v53  ;;  %v2560_v53 = vld [vmem:[%s4090_s9 + $0x148] sm:$0xff] }
 0x2de   : > { %v1641_v54 = vpop.f32.mrf.mxu0  ;;  %v1664_v55 = vpop.f32.mrf.mxu1 }
 0x2df   : > { %v1670_v6 = vadd.f32 %v1641_v54, %v1583_v2  ;;  %v1671_v16 = vadd.f32 %v1664_v55, %v1584_v12  ;;  %v2504_v54 = vld [vmem:[%s4089_s8 + $0xa0] sm:$0xff] }
 0x2e0   : > { %v1787_v55 = vld [vmem:[%s4089_s8] sm:$0xff] }
 0x2e1   : > { %v1680_v15 = vadd.f32 %v1676_v7, %v1670_v6  ;;  %v1681_v22 = vadd.f32 %v1677_v17, %v1671_v16  ;;  %1826 = vmatpush.msrb.mxu0 %v1787_v55  ;;  %v1925_v2 = vld [vmem:[%s4090_s9 + $0x40] sm:$0xff]  ;;  %v1923_v6 = vld [vmem:[%s4090_s9 + $0x30] sm:$0xff] }
 0x2e2   : > { %1938 = vmatpush.msra.mxu1 %v1925_v2  ;;  %v1921_v12 = vld [vmem:[%s4090_s9 + $0x20] sm:$0xff] }
 0x2e3   : > { %v1684_v21 = vmax.f32 %v1680_v15, 0.0  ;;  %v1685_v28 = vmax.f32 %v1681_v22, 0.0  ;;  %v2529_v15 = vld [vmem:[%s4090_s9 + $0x68] sm:$0xff]  ;;  %v2527_v22 = vld [vmem:[%s4090_s9 + $0x58] sm:$0xff]  ;;  %v2559_v55 = vld [vmem:[%s4090_s9 + $0x140] sm:$0xff] }
 0x2e4   : > { %1939 = vmatpush.msra.mxu1 %v1924_v4  ;;  %v2100_v4 = vld [vmem:[%s4092_s11 + $0x18] sm:$0xff] }
 0x2e6   : > { %v1644_v10 = vpop.f32.mrf.mxu0  ;;  %v1667_v11 = vpop.f32.mrf.mxu1  ;;  %1940 = vmatpush.msra.mxu1 %v1923_v6  ;;  %v2098_v6 = vld [vmem:[%s4092_s11 + $0x8] sm:$0xff] }
 0x2e7   : > { %v1672_v13 = vadd.f32 %v1644_v10, %v1585_v8  ;;  %v1673_v14 = vadd.f32 %v1667_v11, %v1586_v9  ;;  %v2546_v8 = vld [vmem:[%s4090_s9 + $0xe8] sm:$0xff]  ;;  %v2545_v9 = vld [vmem:[%s4090_s9 + $0xe0] sm:$0xff]  ;;  %v2531_v11 = vld [vmem:[%s4090_s9 + $0x78] sm:$0xff] }
 0x2e8   : > { %v1922_v10 = vld [vmem:[%s4090_s9 + $0x28] sm:$0xff]  ;;  %2009 = vmatpush.msra.mxu0 %v2546_v8  ;;  %v1915_v8 = vld [vmem:[%s4091_s10] sm:$0x1] }
 0x2e9   : > { %v1682_v18 = vadd.f32 %v1676_v7, %v1672_v13  ;;  %v1683_v20 = vadd.f32 %v1677_v17, %v1673_v14  ;;  %v2532_v7 = vld [vmem:[%s4090_s9 + $0x80] sm:$0xff]  ;;  %v2530_v13 = vld [vmem:[%s4090_s9 + $0x70] sm:$0xff]  ;;  %1941 = vmatpush.msra.mxu1 %v1922_v10  ;;  %v1920_v14 = vld [vmem:[%s4090_s9 + $0x18] sm:$0xff] }
 0x2ea   : > { %2010 = vmatpush.msra.mxu0 %v2545_v9 }
 0x2eb   : > { %v1686_v19 = vmax.f32 %v1682_v18, 0.0  ;;  %v1687_v26 = vmax.f32 %v1683_v20, 0.0  ;;  %1942 = vmatpush.msra.mxu1 %v1921_v12  ;;  %v2528_v20 = vld [vmem:[%s4090_s9 + $0x60] sm:$0xff] }
 0x2ed   : > { %2494 = vmatpush.msk.msrb.mxu3 %vm1693_vm6, %v1686_v19  ;;  %2499 = vmatpush.msk.msrb.mxu2 %vm1693_vm6, %v1686_v19  ;;  %v1919_v19 = vld [vmem:[%s4090_s9 + $0x10] sm:$0xff] }
 0x2ee   : > { %1943 = vmatpush.msra.mxu1 %v1920_v14 }
 0x2ef   : > { %1715 = vmatpush.msrb.mxu3 %v1684_v21  ;;  %1760 = vmatpush.msrb.mxu2 %v1684_v21  ;;  %v1918_v21 = vld [vmem:[%s4090_s9 + $0x8] sm:$0xff] }
 0x2f0   : > { %2495 = vmatmul.msk.f32.vlgmr.msrb.gmra.mxu3 %vm1689_vm7, %v1688_v23  ;;  %2500 = vmatmul.msk.f32.vlgmr.msrb.gmra.mxu2 %vm1689_vm7, %v2498_v24 }
 0x2f1   : > { %2496 = vmatpush.msk.msra.mxu3 %vm1693_vm6, %v1687_v26  ;;  %1872 = vmatpush.msra.mxu2 %v2519_v25 }
 0x2f2   : > { %1944 = vmatpush.msra.mxu1 %v1919_v19 }
 0x2f3   : > { %1735 = vmatpush.msra.mxu3 %v1685_v28  ;;  %1873 = vmatpush.msra.mxu2 %v2518_v27  ;;  %v2543_v27 = vld [vmem:[%s4090_s9 + $0xd0] sm:$0xff] }
 0x2f4   : > { %1945 = vmatpush.msra.mxu1 %v1918_v21 }
 0x2f5   : > { %2501 = vmatpush.msk.msrb.mxu3 %vm1693_vm6, %v1687_v26  ;;  %1874 = vmatpush.msra.mxu2 %v2517_v29  ;;  %v2544_v26 = vld [vmem:[%s4090_s9 + $0xd8] sm:$0xff]  ;;  %v2526_v29 = vld [vmem:[%s4090_s9 + $0x50] sm:$0xff] }
 0x2f6   : > { %2011 = vmatpush.msra.mxu0 %v2544_v26 }
 0x2f7   : > { %1780 = vmatpush.msrb.mxu3 %v1685_v28  ;;  %1875 = vmatpush.msra.mxu2 %v2516_v30  ;;  %v1917_v28 = vld [vmem:[%s4090_s9] sm:$0xff]  ;;  %v2557_v30 = vld [vmem:[%s4090_s9 + $0x138] sm:$0xff] }
 0x2f8   : > { %2497 = vmatmul.msk.f32.vlgmr.msra.gmra.mxu3 %vm1689_vm7, %v1688_v23  ;;  %2012 = vmatpush.msra.mxu0 %v2543_v27 }
 0x2f9   : > { %1876 = vmatpush.msra.mxu2 %v2515_v31  ;;  %1904 = vmatpush.msra.mxu3 %v2523_v56  ;;  %v2568_v31 = vld [vmem:[%s4090_s9 + $0x188] sm:$0xff] }
 0x2fa   : > { %1946 = vmatpush.msra.mxu1 %v1917_v28 }
 0x2fb   : > { %1877 = vmatpush.msra.mxu2 %v2514_v32  ;;  %1905 = vmatpush.msra.mxu3 %v2522_v57  ;;  %v2542_v32 = vld [vmem:[%s4090_s9 + $0xc8] sm:$0xff] }
 0x2fc   : > { %2013 = vmatpush.msra.mxu0 %v2542_v32 }
 0x2fd   : > { %1878 = vmatpush.msra.mxu2 %v2513_v36  ;;  %1906 = vmatpush.msra.mxu3 %v2521_v60  ;;  %v2566_v36 = vld [vmem:[%s4090_s9 + $0x178] sm:$0xff] }
 0x2fe   : > { %2014 = vmatpush.msra.mxu0 %v2541_v37 }
 0x2ff   : > { %1879 = vmatpush.msra.mxu2 %v2512_v38  ;;  %1907 = vmatpush.msra.mxu3 %v2520_v61  ;;  %v2554_v38 = vld [vmem:[%s4090_s9 + $0x120] sm:$0xff] }
 0x300   : > { %2502 = vmatmul.msk.f32.vlgmr.msrb.gmra.mxu3 %vm1689_vm7, %v2498_v24 }
 0x301   : > { %1880 = vmatpush.msra.mxu2 %v2511_v40  ;;  %1973 = vmatpush.msrb.mxu3 %v2535_v1  ;;  %v2540_v40 = vld [vmem:[%s4090_s9 + $0xb8] sm:$0xff] }
 0x302   : > { %2015 = vmatpush.msra.mxu0 %v2540_v40 }
 0x303   : > { %1881 = vmatpush.msra.mxu2 %v2510_v42  ;;  %1974 = vmatpush.msrb.mxu3 %v2534_v3  ;;  %v2553_v42 = vld [vmem:[%s4090_s9 + $0x118] sm:$0xff] }
 0x304   : > { %2016 = vmatpush.msra.mxu0 %v2539_v41 }
 0x305   : > { %1882 = vmatpush.msra.mxu2 %v2509_v44  ;;  %1975 = vmatpush.msrb.mxu3 %v2533_v5  ;;  %v2552_v44 = vld [vmem:[%s4090_s9 + $0x110] sm:$0xff] }
 0x306   : > { %v2099_v5 = vld [vmem:[%s4092_s11 + $0x10] sm:$0xff] }
 0x307   : > { %1883 = vmatpush.msra.mxu2 %v2508_v46  ;;  %1976 = vmatpush.msrb.mxu3 %v2532_v7  ;;  %v2538_v46 = vld [vmem:[%s4090_s9 + $0xa8] sm:$0xff]  ;;  %v2097_v7 = vld [vmem:[%s4092_s11] sm:$0xff] }
 0x308   : > { %2017 = vmatpush.msra.mxu0 %v2538_v46 }
 0x309   : > { %1884 = vmatpush.msra.mxu2 %v2507_v48  ;;  %1977 = vmatpush.msrb.mxu3 %v2531_v11  ;;  %v2562_v48 = vld [vmem:[%s4090_s9 + $0x158] sm:$0xff] }
 0x30a   : > { %2018 = vmatpush.msra.mxu0 %v2537_v49 }
 0x30b   : > { %1885 = vmatpush.msra.mxu2 %v2506_v50  ;;  %1978 = vmatpush.msrb.mxu3 %v2530_v13  ;;  %v2550_v50 = vld [vmem:[%s4090_s9 + $0x100] sm:$0xff] }
 0x30d   : > { %1886 = vmatpush.msra.mxu2 %v2505_v52  ;;  %1979 = vmatpush.msrb.mxu3 %v2529_v15  ;;  %v2549_v52 = vld [vmem:[%s4090_s9 + $0xf8] sm:$0xff] }
 0x30f   : > { %1887 = vmatpush.msra.mxu2 %v2504_v54  ;;  %1980 = vmatpush.msrb.mxu3 %v2528_v20  ;;  %v2548_v54 = vld [vmem:[%s4090_s9 + $0xf0] sm:$0xff]  ;;  %v2101_v20 = vld [vmem:[%s4093_s12] sm:$0x1] }
 0x311   : > { %1981 = vmatpush.msrb.mxu3 %v2527_v22  ;;  %2117 = vmatpush.msrb.mxu2 %v2100_v4 }
 0x313   : > { %1982 = vmatpush.msrb.mxu3 %v2526_v29  ;;  %2118 = vmatpush.msrb.mxu2 %v2099_v5 }
 0x315   : > { %2119 = vmatpush.msrb.mxu2 %v2098_v6 }
 0x317   : > { %2120 = vmatpush.msrb.mxu2 %v2097_v7 }
 0x373   : > { %v1717_v16 = vpop.f32.mrf.mxu3  ;;  %v1762_v17 = vpop.f32.mrf.mxu2 }
 0x374   : > { %v1785_v18 = vmax.f32 %v1717_v16, %v1762_v17 }
 0x376   : > { %1888 = vmatmul.f32.vlgmr.msra.gmra.mxu2 %v1785_v18  ;;  %1827 = vmatmul.f32.vlgmr.msrb.gmra.mxu0 %v1785_v18 }
 0x37b   : > { %v1737_v23 = vpop.f32.mrf.mxu3 }
 0x383   : > { %v1782_v24 = vpop.f32.mrf.mxu3 }
 0x384   : > { %v1786_v25 = vmax.f32 %v1737_v23, %v1782_v24 }
 0x386   : > { %2524 = vmatmul.msk.f32.vlgmr.msra.gmra.mxu3 %vm1807_vm8, %v1786_v25  ;;  %2503 = vmatmul.msk.f32.vlgmr.msrb.gmra.mxu1 %vm1807_vm8, %v1786_v25 }
 0x387   : > { %2045 = vmatpush.msrb.mxu1 %v2557_v30  ;;  %2081 = vmatpush.msra.mxu3 %v2568_v31 }
 0x389   : > { %2046 = vmatpush.msrb.mxu1 %v2556_v33  ;;  %2082 = vmatpush.msra.mxu3 %v2567_v34 }
 0x38b   : > { %2047 = vmatpush.msrb.mxu1 %v2555_v35  ;;  %2083 = vmatpush.msra.mxu3 %v2566_v36 }
 0x38d   : > { %2048 = vmatpush.msrb.mxu1 %v2554_v38  ;;  %2084 = vmatpush.msra.mxu3 %v2565_v39 }
 0x38f   : > { %2049 = vmatpush.msrb.mxu1 %v2553_v42  ;;  %2085 = vmatpush.msra.mxu3 %v2564_v43 }
 0x391   : > { %2050 = vmatpush.msrb.mxu1 %v2552_v44  ;;  %2086 = vmatpush.msra.mxu3 %v2563_v45 }
 0x393   : > { %2051 = vmatpush.msrb.mxu1 %v2551_v47  ;;  %2087 = vmatpush.msra.mxu3 %v2562_v48 }
 0x395   : > { %2052 = vmatpush.msrb.mxu1 %v2550_v50  ;;  %2088 = vmatpush.msra.mxu3 %v2561_v51 }
 0x397   : > { %2053 = vmatpush.msrb.mxu1 %v2549_v52  ;;  %2089 = vmatpush.msra.mxu3 %v2560_v53 }
 0x399   : > { %2054 = vmatpush.msrb.mxu1 %v2548_v54  ;;  %2090 = vmatpush.msra.mxu3 %v2559_v55 }
 0x3f3   : > { %v1828_v57 = vpop.f32.mrf.mxu0 }
 0x3f9   : > { %v1889_v58 = vpop.f32.mrf.mxu2 }
 0x403   : > { %v1848_v56 = vpop.f32.mrf.mxu1 }
 0x404   : > { %v1849_v60 = vadd.f32 %v1848_v56, %v1828_v57 }
 0x409   : > { %v1909_v59 = vpop.f32.mrf.mxu3 }
 0x40a   : > { %v1910_v61 = vadd.f32 %v1909_v59, %v1889_v58 }
 0x40c   : > { %v1912_v62 = vmax.f32 %v1849_v60, %v1910_v61 }
 0x40e   : > { %1914 = vst.msk [vmem:[#allocation3] sm:$0x1f] %vm1913_vm9, %v1912_v62 }
 0x415   : > { %v1916_v63 = vld [vmem:[#allocation3] sm:$0x1]  ;;  %v1952_v0 = vld [vmem:[#allocation3 + $0x1] sm:$0x1]  ;;  %v1988_v1 = vld [vmem:[#allocation3 + $0x2] sm:$0x1] }
 0x416   : > { %2525 = vmatmul.msk.f32.vlgmr.msra.gmra.mxu1 %vm1927_vm10, %v1916_v63  ;;  %2536 = vmatmul.msk.f32.vlgmr.msrb.gmra.mxu3 %vm1927_vm10, %v1952_v0  ;;  %v2024_v2 = vld [vmem:[#allocation3 + $0x3] sm:$0x1]  ;;  %v2060_v3 = vld [vmem:[#allocation3 + $0x4] sm:$0x1] }
 0x417   : > { %2547 = vmatmul.msk.f32.vlgmr.msra.gmra.mxu0 %vm1927_vm10, %v1988_v1 }
 0x41e   : > { %2558 = vmatmul.msk.f32.vlgmr.msrb.gmra.mxu1 %vm1927_vm10, %v2024_v2  ;;  %2569 = vmatmul.msk.f32.vlgmr.msra.gmra.mxu3 %vm1927_vm10, %v2060_v3 }
 0x493   : > { %v1948_v9 = vpop.f32.mrf.mxu1 }
 0x494   : > { %v1951_v10 = vadd.f32 %v1948_v9, %v1915_v8  ;;  %v2020_v13 = vpop.f32.mrf.mxu0 }
 0x499   : > { %v1984_v11 = vpop.f32.mrf.mxu3 }
 0x49a   : > { %v1987_v12 = vadd.f32 %v1984_v11, %v1951_v10 }
 0x49b   : > { %v2056_v15 = vpop.f32.mrf.mxu1 }
 0x49c   : > { %v2023_v14 = vadd.f32 %v2020_v13, %v1987_v12 }
 0x49e   : > { %v2059_v16 = vadd.f32 %v2056_v15, %v2023_v14 }
 0x4a1   : > { %v2092_v17 = vpop.f32.mrf.mxu3 }
 0x4a2   : > { %v2095_v18 = vadd.f32 %v2092_v17, %v2059_v16 }
 0x4a4   : > { %v2096_v19 = vmax.f32 %v2095_v18, 0.0 }
 0x4a6   : > { %2570 = vmatmul.msk.f32.vlgmr.msrb.gmra.mxu2 %vm1807_vm8, %v2096_v19 }
 0x529   : > { %v2122_v21 = vpop.f32.mrf.mxu2 }
 0x52a   : > { %v2123_v22 = vadd.f32 %v2122_v21, %v2101_v20 }
 0x52c   : > { %2126 = vst.msk [vmem:[%s432_s19] sm:$0x1] %vm2125_vm11, %v2123_v22 }
 0x52d   : > { %2640 = shalt.err (!%p2637_p3)
}
 0x52e   : > { %2574 = dma.vmem_to_hbm [thread:$0]  (%p2785_p5), %s2139_s17, 16, %s2141_s21, %s2128_s22  }
 0x52f PF: > { %p2580_p4 = scmp.ge.s32.totalorder %s2675_s28, 2  ;;  %s2152_s14 = sand.u32 1, %s2663_s25  }
 0x530   : > { %s2153_s19 = scalar_lea.sflag [#allocation5], %s2152_s14 }
 0x531   : > { %p2577_p7 = pnand %p2580_p4, %p2789_p6 }
 0x533   : > { %p2578_p8 = pneg %p2577_p7 }
 0x535   : > { %2658 = dma.done.wait (%p2578_p8), %s2153_s19, 16  }
 0x536   : > { %2660 = vsyncadd (%p2578_p8), %s2153_s19, 4294967280  ;;  %s4106_s28 = sld [smem:[#allocation8_spill]]  ;;  %s4109_s25 = smov %s2667_s26 }
 0x537   : > { %s4107_s23 = sld [smem:[#allocation7_spill]] }
 0x538   : > { %s4108_s27 = sld [smem:[#allocation9_spill]] }
 0x53c   : > { %p23_p9 = scmp.ge.s32.totalorder %s4106_s28, 4  }
 0x53d   : > { %s4110_s26 = smov %s4107_s23 }
 0x53e   :  { %25 = sbr.rel (!%p23_p9) target bundleno = 3 (0x3), region = 123 }
 0x543   :  { %2158 = vsyncpa [#allocation5], 1 }
 0x544   :  { %2160 = vsyncpa [#allocation5 + $0x1], 1 }

</bundles_post_ra>
